<compile_context>
chip_gen: v6e
topology: v6e:2x2x1
jax: 0.10.0
libtpu: 0.0.40
codegen_flags: <defaults>
</compile_context>

<pallas_src>
import numpy as np
import jax
import jax.numpy as jnp
from jax.experimental import pallas as pl
from jax.experimental.pallas import tpu as pltpu


# --------------------------- bitonic sort network --------------------------- #
def bitonic_layers(c):
    """(k, j) stages of an ascending bitonic sorting network over c = 2**m rows."""
    layers = []
    k = 2
    while k <= c:
        j = k // 2
        while j >= 1:
            layers.append((k, j))
            j //= 2
        k *= 2
    return layers


# ------------------------------ Pallas kernel ------------------------------- #
def make_fss_kernel(k1, k2, k3, n_sort_layers):
    """Builds the fused FSSConv1dCell forward kernel (one packed tile per step)."""

    def shifted(h, k):
        # Full-width "roll by -k": column t holds h[:, (t + k) mod Lp].
        # The wrapped tail columns are per-segment garbage discarded by the
        # wrapper; keeping full width keeps every op / store lane-dense.
        if k == 0:
            return h
        return jnp.concatenate([h[:, k:], h[:, :k]], axis=-1)

    def kconv(h, wf_ref, b_ref, K):
        # Grouped Conv1d (stride 1, no padding) as a single full-width im2col matmul.
        if K == 1:
            hcat = h
        else:
            hcat = jnp.concatenate([shifted(h, k) for k in range(K)], axis=0)
        return jnp.dot(wf_ref[...], hcat,
                       preferred_element_type=jnp.float32) + b_ref[...]

    def kernel(x_ref, w1_ref, b1_ref, w2_ref, b2_ref,
               wa1s_ref, wa1x_ref, ba1_ref, wa2_ref, ba2_ref,
               w3_ref, b3_ref, bperm_ref, bmask_ref, o_ref):
        x = x_ref[0].astype(jnp.float32)                  # (C_in, Nb*L)

        # Conv1d(k=3) -> Shuffle1d   (shuffle folded into w1/b1 on the host)
        h = kconv(x, w1_ref, b1_ref, k1)
        # Conv1d(k=3) -> Shuffle1d   (shuffle folded into w2/b2 on the host)
        h = kconv(h, w2_ref, b2_ref, k2)

        # ----------------------------- SortAttn -----------------------------
        # Ascending sort along channels (sublanes) via a bitonic network.
        # Partner exchange is a constant permutation matmul; keep-min masks are
        # precomputed on the host.
        s = h
        for li in range(n_sort_layers):
            partner = jnp.dot(bperm_ref[li], s, preferred_element_type=jnp.float32)
            mn = jnp.minimum(s, partner)
            mx = jnp.maximum(s, partner)
            s = jnp.where(bmask_ref[li] != 0.0, mn, mx)

        # 1x1 grouped conv on cat(sorted, x): wa1 pre-split on the host;
        # the inner Shuffle1d is folded into wa2; sigmoid gate.
        a = (jnp.dot(wa1s_ref[...], s, preferred_element_type=jnp.float32)
             + jnp.dot(wa1x_ref[...], h, preferred_element_type=jnp.float32)
             + ba1_ref[...])
        a = jnp.dot(wa2_ref[...], a, preferred_element_type=jnp.float32) + ba2_ref[...]
        h = h * jax.nn.sigmoid(a)

        # Conv1d(k = kernel_size - 4, stride)
        # TODO(synk): stride > 1 down-sampling is not implemented in-kernel;
        # the module default (stride=1) is what this kernel reproduces.
        y = kconv(h, w3_ref, b3_ref, k3)
        o_ref[0] = y.astype(o_ref.dtype)                  # lane-dense, unmasked store

    return kernel


# --------------------------------- wrapper ---------------------------------- #
def fss_conv1d_cell(x, params, kernel_size, stride=1, lane_target=128):
    """Fresh-state FSSConv1dCell forward applied to every batch element of x."""
    assert stride == 1, "kernel supports stride=1 (module default)"
    B, C_in, L = x.shape
    assert L >= kernel_size, "short inputs are buffered by the cell, not convolved"
    C_out = params["w1f"].shape[0]
    L_out = (L - kernel_size) // stride + 1
    k3 = kernel_size - 4

    # Pack Nb batch elements along the lane axis (lane-dense compute/stores,
    # >= 2 parallel grid steps when B allows so v7x can use both TensorCores).
    Nb = min(B, max(1, lane_target // L))
    nblk = pl.cdiv(B, Nb)
    B_pad = nblk * Nb
    if B_pad != B:
        x = jnp.pad(x, ((0, B_pad - B), (0, 0), (0, 0)))
    Lp = Nb * L
    Lp_pad = ((Lp + 127) // 128) * 128                    # keep widths % 128 == 0
    xp = x.reshape(nblk, Nb, C_in, L).transpose(0, 2, 1, 3).reshape(nblk, C_in, Lp)
    if Lp_pad != Lp:
        xp = jnp.pad(xp, ((0, 0), (0, 0), (0, Lp_pad - Lp)))

    kernel = make_fss_kernel(3, 3, k3, params["bperm"].shape[0])

    arg_names = ["w1f", "b1f", "w2f", "b2f", "wa1s", "wa1x", "ba1f",
                 "wa2p", "ba2f", "w3f", "b3f", "bperm", "bmask"]
    args = [params[n] for n in arg_names]

    def full_spec(a):
        nd = a.ndim
        return pl.BlockSpec(a.shape, lambda b, _nd=nd: (0,) * _nd)

    yp = pl.pallas_call(
        kernel,
        out_shape=jax.ShapeDtypeStruct((nblk, C_out, Lp_pad), x.dtype),
        grid=(nblk,),
        in_specs=[pl.BlockSpec((1, C_in, Lp_pad), lambda b: (b, 0, 0))]
                 + [full_spec(a) for a in args],
        out_specs=pl.BlockSpec((1, C_out, Lp_pad), lambda b: (b, 0, 0)),
        compiler_params=pltpu.CompilerParams(dimension_semantics=("parallel",)),
    )(xp, *args)

    # Unpack: packed segment s of each block holds valid columns [s*L, s*L+L_out).
    cols = jnp.asarray((np.arange(Nb)[:, None] * L
                        + np.arange(L_out)[None, :]).reshape(-1))
    yv = yp[:, :, cols]                                   # (nblk, C_out, Nb*L_out)
    y = (yv.reshape(nblk, C_out, Nb, L_out)
           .transpose(0, 2, 1, 3)
           .reshape(B_pad, C_out, L_out))
    return y[:B]


# --------------------------- parameter construction -------------------------- #
def make_grouped_conv(key, c_in, c_out, k, groups):
    kw, kb = jax.random.split(key)
    fan_in = (c_in // groups) * k
    bound = 1.0 / np.sqrt(fan_in)
    w = jax.random.uniform(kw, (c_out, c_in // groups, k), jnp.float32, -bound, bound)
    b = jax.random.uniform(kb, (c_out,), jnp.float32, -bound, bound)
    return w, b


def densify(w_grouped, groups):
    """(C_out, C_in/g, K) grouped weight -> (K, C_out, C_in) block-diagonal dense."""
    w = np.asarray(w_grouped)
    c_out, cin_pg, k = w.shape
    c_in = cin_pg * groups
    out_pg = c_out // groups
    W = np.zeros((c_out, c_in, k), np.float32)
    for g in range(groups):
        W[g * out_pg:(g + 1) * out_pg, g * cin_pg:(g + 1) * cin_pg, :] = \
            w[g * out_pg:(g + 1) * out_pg]
    return np.transpose(W, (2, 0, 1))


def shuffle_perm(channels, groups):
    """out[n] = in[perm[n]] for Shuffle1d(groups)."""
    cpg = channels // groups
    return np.arange(channels).reshape(groups, cpg).T.reshape(-1)


def build_params(key, in_channels, out_channels, kernel_size, groups):
    assert in_channels % groups == 0 and out_channels % groups == 0
    assert (out_channels & (out_channels - 1)) == 0, \
        "bitonic channel sort requires a power-of-two channel count"
    # TODO(synk): non-power-of-two channel counts would need +inf channel padding
    # inside the sorting network.

    keys = jax.random.split(key, 5)
    k3 = kernel_size - 4
    w1g, b1 = make_grouped_conv(keys[0], in_channels, out_channels, 3, groups)
    w2g, b2 = make_grouped_conv(keys[1], out_channels, out_channels, 3, groups)
    wa1g, ba1 = make_grouped_conv(keys[2], out_channels * 2, out_channels, 1, groups)
    wa2g, ba2 = make_grouped_conv(keys[3], out_channels, out_channels, 1, groups)
    w3g, b3 = make_grouped_conv(keys[4], out_channels, out_channels, k3, groups)

    W1 = densify(w1g, groups)          # (3, C_out, C_in) block-diagonal dense
    W2 = densify(w2g, groups)
    WA1 = densify(wa1g, groups)[0]     # (C_out, 2*C_out)
    WA2 = densify(wa2g, groups)[0]
    W3 = densify(w3g, groups)          # (k3, C_out, C_out)
    b1, b2, ba1, ba2, b3 = (np.asarray(v).reshape(-1, 1)
                            for v in (b1, b2, ba1, ba2, b3))

    perm = shuffle_perm(out_channels, groups)     # out[n] = in[perm[n]]
    invperm = np.argsort(perm)

    # ---- host-side folding (exact: pure index permutations in numpy) --------
    #   P @ M == M[perm]  (row permute),  M @ P == M[:, invperm]  (col permute)
    # plus per-conv im2col flattening (K, C_out, C_in) -> (C_out, K*C_in).
    flat = lambda W: np.concatenate(list(W), axis=1)
    w1f = flat(W1[:, perm, :]); b1f = b1[perm]        # fold Shuffle1d after conv1
    w2f = flat(W2[:, perm, :]); b2f = b2[perm]        # fold Shuffle1d after conv2
    wa1s = np.ascontiguousarray(WA1[:, :out_channels])   # sorted-half
    wa1x = np.ascontiguousarray(WA1[:, out_channels:])   # identity-half
    wa2p = WA2[:, invperm]                            # fold SortAttn's Shuffle1d
    w3f = flat(W3)

    # Bitonic network constants: partner permutation i <-> i^j and keep-min mask
    # per layer (masks precomputed on the host, no in-kernel bit twiddling).
    layers = bitonic_layers(out_channels)
    n_layers = len(layers)
    bperm = np.zeros((n_layers, out_channels, out_channels), np.float32)
    bmask = np.zeros((n_layers, out_channels, 1), np.float32)
    idx = np.arange(out_channels)
    for li, (kk, jj) in enumerate(layers):
        bperm[li, idx, idx ^ jj] = 1.0
        keep_min = ((idx & kk) == 0) == ((idx & jj) == 0)
        bmask[li, :, 0] = keep_min.astype(np.float32)

    j = jnp.asarray
    return {
        # fused kernel params
        "w1f": j(w1f), "b1f": j(b1f), "w2f": j(w2f), "b2f": j(b2f),
        "wa1s": j(wa1s), "wa1x": j(wa1x), "ba1f": j(ba1),
        "wa2p": j(wa2p), "ba2f": j(ba2),
        "w3f": j(w3f), "b3f": j(b3),
        "bperm": j(bperm), "bmask": j(bmask),
        # raw (unfolded) params for the plain-JAX reference
        "W1": j(W1), "b1": j(b1), "W2": j(W2), "b2": j(b2),
        "WA1": j(WA1), "ba1": j(ba1), "WA2": j(WA2), "ba2": j(ba2),
        "W3": j(W3), "b3": j(b3), "perm_idx": j(perm),
    }


# ----------------------------- plain-JAX reference --------------------------- #
def ref_forward(x, p):
    def conv(h, W, b):
        K = W.shape[0]
        Lo = h.shape[-1] - K + 1
        acc = jnp.zeros((h.shape[0], W.shape[1], Lo), jnp.float32)
        for k in range(K):
            acc = acc + jnp.einsum("oc,bcl->bol", W[k], h[:, :, k:k + Lo])
        return acc + b[None]

    perm = p["perm_idx"]
    h = conv(x, p["W1"], p["b1"])[:, perm]
    h = conv(h, p["W2"], p["b2"])[:, perm]
    s = jnp.sort(h, axis=1)
    cat = jnp.concatenate([s, h], axis=1)
    a = jnp.einsum("oc,bcl->bol", p["WA1"], cat) + p["ba1"][None]
    a = a[:, perm]
    a = jnp.einsum("oc,bcl->bol", p["WA2"], a) + p["ba2"][None]
    h = h * jax.nn.sigmoid(a)
    return conv(h, p["W3"], p["b3"])


# ----------------------------------- main ------------------------------------ #
if __name__ == "__main__":
    in_channels, out_channels = 16, 16
    kernel_size, stride, groups = 7, 1, 4
    B, L = 8, 32     # 4 batch elements packed per 128-lane tile -> 2 parallel grid steps

    key = jax.random.PRNGKey(0)
    kx, kp = jax.random.split(key)
    x = jax.random.normal(kx, (B, in_channels, L), jnp.float32)
    params = build_params(kp, in_channels, out_channels, kernel_size, groups)

    fwd = jax.jit(lambda xx: fss_conv1d_cell(xx, params, kernel_size, stride))
    y = jax.block_until_ready(fwd(x))

    y_ref = jax.block_until_ready(ref_forward(x, params))
    np.testing.assert_allclose(np.asarray(y), np.asarray(y_ref), rtol=1e-4, atol=1e-4)

    assert y.shape == (B, out_channels, (L - kernel_size) // stride + 1)
    print("KERNEL_OK")
</pallas_src>

<mosaic_0001>
module attributes {stable_mosaic.version = 11 : i64} {
  func.func @kernel(%arg0: i32, %arg1: memref<1x16x128xf32, #tpu.memory_space<vmem>>, %arg2: memref<16x48xf32, #tpu.memory_space<vmem>>, %arg3: memref<16x1xf32, #tpu.memory_space<vmem>>, %arg4: memref<16x48xf32, #tpu.memory_space<vmem>>, %arg5: memref<16x1xf32, #tpu.memory_space<vmem>>, %arg6: memref<16x16xf32, #tpu.memory_space<vmem>>, %arg7: memref<16x16xf32, #tpu.memory_space<vmem>>, %arg8: memref<16x1xf32, #tpu.memory_space<vmem>>, %arg9: memref<16x16xf32, #tpu.memory_space<vmem>>, %arg10: memref<16x1xf32, #tpu.memory_space<vmem>>, %arg11: memref<16x48xf32, #tpu.memory_space<vmem>>, %arg12: memref<16x1xf32, #tpu.memory_space<vmem>>, %arg13: memref<10x16x16xf32, #tpu.memory_space<vmem>>, %arg14: memref<10x16x1xf32, #tpu.memory_space<vmem>>, %arg15: memref<1x16x128xf32, #tpu.memory_space<vmem>>) attributes {dimension_semantics = [#tpu.dimension_semantics<parallel>], iteration_bounds = array<i64: 2>, scalar_prefetch = 0 : i64, scratch_operands = 0 : i64, tpu.core_type = #tpu.core_type<tc>, window_params = [{transform_indices = @transform_0, window_bounds = array<i64: 1, 16, 128>}, {pipeline_mode = #tpu.pipeline_mode<synchronous>, transform_indices = @transform_1, window_bounds = array<i64: 16, 48>}, {pipeline_mode = #tpu.pipeline_mode<synchronous>, transform_indices = @transform_2, window_bounds = array<i64: 16, 1>}, {pipeline_mode = #tpu.pipeline_mode<synchronous>, transform_indices = @transform_3, window_bounds = array<i64: 16, 48>}, {pipeline_mode = #tpu.pipeline_mode<synchronous>, transform_indices = @transform_4, window_bounds = array<i64: 16, 1>}, {pipeline_mode = #tpu.pipeline_mode<synchronous>, transform_indices = @transform_5, window_bounds = array<i64: 16, 16>}, {pipeline_mode = #tpu.pipeline_mode<synchronous>, transform_indices = @transform_6, window_bounds = array<i64: 16, 16>}, {pipeline_mode = #tpu.pipeline_mode<synchronous>, transform_indices = @transform_7, window_bounds = array<i64: 16, 1>}, {pipeline_mode = #tpu.pipeline_mode<synchronous>, transform_indices = @transform_8, window_bounds = array<i64: 16, 16>}, {pipeline_mode = #tpu.pipeline_mode<synchronous>, transform_indices = @transform_9, window_bounds = array<i64: 16, 1>}, {pipeline_mode = #tpu.pipeline_mode<synchronous>, transform_indices = @transform_10, window_bounds = array<i64: 16, 48>}, {pipeline_mode = #tpu.pipeline_mode<synchronous>, transform_indices = @transform_11, window_bounds = array<i64: 16, 1>}, {pipeline_mode = #tpu.pipeline_mode<synchronous>, transform_indices = @transform_12, window_bounds = array<i64: 10, 16, 16>}, {pipeline_mode = #tpu.pipeline_mode<synchronous>, transform_indices = @transform_13, window_bounds = array<i64: 10, 16, 1>}, {transform_indices = @transform_14, window_bounds = array<i64: 1, 16, 128>}]} {
    %c0 = arith.constant 0 : index
    %c0_0 = arith.constant 0 : index
    %c0_1 = arith.constant 0 : index
    %0 = vector.load %arg1[%c0, %c0_0, %c0_1] : memref<1x16x128xf32, #tpu.memory_space<vmem>>, vector<1x16x128xf32>
    %1 = vector.shape_cast %0 : vector<1x16x128xf32> to vector<16x128xf32>
    %2 = vector.extract_strided_slice %1 {offsets = [0, 1], sizes = [16, 127], strides = [1, 1]} : vector<16x128xf32> to vector<16x127xf32>
    %3 = vector.extract_strided_slice %1 {offsets = [0, 0], sizes = [16, 1], strides = [1, 1]} : vector<16x128xf32> to vector<16x1xf32>
    %4 = tpu.concatenate %2, %3 in 1 : vector<16x127xf32>, vector<16x1xf32> -> vector<16x128xf32>
    %5 = vector.extract_strided_slice %1 {offsets = [0, 2], sizes = [16, 126], strides = [1, 1]} : vector<16x128xf32> to vector<16x126xf32>
    %6 = vector.extract_strided_slice %1 {offsets = [0, 0], sizes = [16, 2], strides = [1, 1]} : vector<16x128xf32> to vector<16x2xf32>
    %7 = tpu.concatenate %5, %6 in 1 : vector<16x126xf32>, vector<16x2xf32> -> vector<16x128xf32>
    %8 = tpu.concatenate %1, %4, %7 in 0 : vector<16x128xf32>, vector<16x128xf32>, vector<16x128xf32> -> vector<48x128xf32>
    %c0_2 = arith.constant 0 : index
    %c0_3 = arith.constant 0 : index
    %9 = vector.load %arg2[%c0_2, %c0_3] : memref<16x48xf32, #tpu.memory_space<vmem>>, vector<16x48xf32>
    %cst = arith.constant dense<0.000000e+00> : vector<16x128xf32>
    %10 = tpu.matmul %9, %8, %cst {dimension_numbers = #tpu.dot_dimension_numbers<[1], [0], [0], [1], [0, 0, 1, 1], [], []>} : vector<16x48xf32>, vector<48x128xf32>, vector<16x128xf32> -> vector<16x128xf32>
    %c0_4 = arith.constant 0 : index
    %c0_5 = arith.constant 0 : index
    %11 = vector.load %arg3[%c0_4, %c0_5] : memref<16x1xf32, #tpu.memory_space<vmem>>, vector<16x1xf32>
    %12 = vector.broadcast %11 : vector<16x1xf32> to vector<16x128xf32>
    %13 = arith.addf %10, %12 : vector<16x128xf32>
    %14 = vector.extract_strided_slice %13 {offsets = [0, 1], sizes = [16, 127], strides = [1, 1]} : vector<16x128xf32> to vector<16x127xf32>
    %15 = vector.extract_strided_slice %13 {offsets = [0, 0], sizes = [16, 1], strides = [1, 1]} : vector<16x128xf32> to vector<16x1xf32>
    %16 = tpu.concatenate %14, %15 in 1 : vector<16x127xf32>, vector<16x1xf32> -> vector<16x128xf32>
    %17 = vector.extract_strided_slice %13 {offsets = [0, 2], sizes = [16, 126], strides = [1, 1]} : vector<16x128xf32> to vector<16x126xf32>
    %18 = vector.extract_strided_slice %13 {offsets = [0, 0], sizes = [16, 2], strides = [1, 1]} : vector<16x128xf32> to vector<16x2xf32>
    %19 = tpu.concatenate %17, %18 in 1 : vector<16x126xf32>, vector<16x2xf32> -> vector<16x128xf32>
    %20 = tpu.concatenate %13, %16, %19 in 0 : vector<16x128xf32>, vector<16x128xf32>, vector<16x128xf32> -> vector<48x128xf32>
    %c0_6 = arith.constant 0 : index
    %c0_7 = arith.constant 0 : index
    %21 = vector.load %arg4[%c0_6, %c0_7] : memref<16x48xf32, #tpu.memory_space<vmem>>, vector<16x48xf32>
    %cst_8 = arith.constant dense<0.000000e+00> : vector<16x128xf32>
    %22 = tpu.matmul %21, %20, %cst_8 {dimension_numbers = #tpu.dot_dimension_numbers<[1], [0], [0], [1], [0, 0, 1, 1], [], []>} : vector<16x48xf32>, vector<48x128xf32>, vector<16x128xf32> -> vector<16x128xf32>
    %c0_9 = arith.constant 0 : index
    %c0_10 = arith.constant 0 : index
    %23 = vector.load %arg5[%c0_9, %c0_10] : memref<16x1xf32, #tpu.memory_space<vmem>>, vector<16x1xf32>
    %24 = vector.broadcast %23 : vector<16x1xf32> to vector<16x128xf32>
    %25 = arith.addf %22, %24 : vector<16x128xf32>
    %c0_11 = arith.constant 0 : index
    %c0_12 = arith.constant 0 : index
    %c0_13 = arith.constant 0 : index
    %26 = vector.load %arg13[%c0_11, %c0_12, %c0_13] : memref<10x16x16xf32, #tpu.memory_space<vmem>>, vector<1x16x16xf32>
    %27 = vector.shape_cast %26 : vector<1x16x16xf32> to vector<16x16xf32>
    %cst_14 = arith.constant dense<0.000000e+00> : vector<16x128xf32>
    %28 = tpu.matmul %27, %25, %cst_14 {dimension_numbers = #tpu.dot_dimension_numbers<[1], [0], [0], [1], [0, 0, 1, 1], [], []>} : vector<16x16xf32>, vector<16x128xf32>, vector<16x128xf32> -> vector<16x128xf32>
    %29 = arith.minimumf %25, %28 : vector<16x128xf32>
    %30 = arith.maximumf %25, %28 : vector<16x128xf32>
    %c0_15 = arith.constant 0 : index
    %c0_16 = arith.constant 0 : index
    %c0_17 = arith.constant 0 : index
    %31 = vector.load %arg14[%c0_15, %c0_16, %c0_17] : memref<10x16x1xf32, #tpu.memory_space<vmem>>, vector<1x16x1xf32>
    %32 = vector.shape_cast %31 : vector<1x16x1xf32> to vector<16x1xf32>
    %cst_18 = arith.constant 0.000000e+00 : f32
    %33 = vector.broadcast %cst_18 : f32 to vector<16x1xf32>
    %34 = arith.cmpf one, %32, %33 : vector<16x1xf32>
    %35 = vector.shape_cast %34 : vector<16x1xi1> to vector<16x1xi1>
    %36 = vector.broadcast %35 : vector<16x1xi1> to vector<16x128xi1>
    %37 = arith.select %36, %29, %30 : vector<16x128xi1>, vector<16x128xf32>
    %c1 = arith.constant 1 : index
    %c0_19 = arith.constant 0 : index
    %c0_20 = arith.constant 0 : index
    %38 = vector.load %arg13[%c1, %c0_19, %c0_20] : memref<10x16x16xf32, #tpu.memory_space<vmem>>, vector<1x16x16xf32>
    %39 = vector.shape_cast %38 : vector<1x16x16xf32> to vector<16x16xf32>
    %cst_21 = arith.constant dense<0.000000e+00> : vector<16x128xf32>
    %40 = tpu.matmul %39, %37, %cst_21 {dimension_numbers = #tpu.dot_dimension_numbers<[1], [0], [0], [1], [0, 0, 1, 1], [], []>} : vector<16x16xf32>, vector<16x128xf32>, vector<16x128xf32> -> vector<16x128xf32>
    %41 = arith.minimumf %37, %40 : vector<16x128xf32>
    %42 = arith.maximumf %37, %40 : vector<16x128xf32>
    %c1_22 = arith.constant 1 : index
    %c0_23 = arith.constant 0 : index
    %c0_24 = arith.constant 0 : index
    %43 = vector.load %arg14[%c1_22, %c0_23, %c0_24] : memref<10x16x1xf32, #tpu.memory_space<vmem>>, vector<1x16x1xf32>
    %44 = vector.shape_cast %43 : vector<1x16x1xf32> to vector<16x1xf32>
    %cst_25 = arith.constant 0.000000e+00 : f32
    %45 = vector.broadcast %cst_25 : f32 to vector<16x1xf32>
    %46 = arith.cmpf one, %44, %45 : vector<16x1xf32>
    %47 = vector.shape_cast %46 : vector<16x1xi1> to vector<16x1xi1>
    %48 = vector.broadcast %47 : vector<16x1xi1> to vector<16x128xi1>
    %49 = arith.select %48, %41, %42 : vector<16x128xi1>, vector<16x128xf32>
    %c2 = arith.constant 2 : index
    %c0_26 = arith.constant 0 : index
    %c0_27 = arith.constant 0 : index
    %50 = vector.load %arg13[%c2, %c0_26, %c0_27] : memref<10x16x16xf32, #tpu.memory_space<vmem>>, vector<1x16x16xf32>
    %51 = vector.shape_cast %50 : vector<1x16x16xf32> to vector<16x16xf32>
    %cst_28 = arith.constant dense<0.000000e+00> : vector<16x128xf32>
    %52 = tpu.matmul %51, %49, %cst_28 {dimension_numbers = #tpu.dot_dimension_numbers<[1], [0], [0], [1], [0, 0, 1, 1], [], []>} : vector<16x16xf32>, vector<16x128xf32>, vector<16x128xf32> -> vector<16x128xf32>
    %53 = arith.minimumf %49, %52 : vector<16x128xf32>
    %54 = arith.maximumf %49, %52 : vector<16x128xf32>
    %c2_29 = arith.constant 2 : index
    %c0_30 = arith.constant 0 : index
    %c0_31 = arith.constant 0 : index
    %55 = vector.load %arg14[%c2_29, %c0_30, %c0_31] : memref<10x16x1xf32, #tpu.memory_space<vmem>>, vector<1x16x1xf32>
    %56 = vector.shape_cast %55 : vector<1x16x1xf32> to vector<16x1xf32>
    %cst_32 = arith.constant 0.000000e+00 : f32
    %57 = vector.broadcast %cst_32 : f32 to vector<16x1xf32>
    %58 = arith.cmpf one, %56, %57 : vector<16x1xf32>
    %59 = vector.shape_cast %58 : vector<16x1xi1> to vector<16x1xi1>
    %60 = vector.broadcast %59 : vector<16x1xi1> to vector<16x128xi1>
    %61 = arith.select %60, %53, %54 : vector<16x128xi1>, vector<16x128xf32>
    %c3 = arith.constant 3 : index
    %c0_33 = arith.constant 0 : index
    %c0_34 = arith.constant 0 : index
    %62 = vector.load %arg13[%c3, %c0_33, %c0_34] : memref<10x16x16xf32, #tpu.memory_space<vmem>>, vector<1x16x16xf32>
    %63 = vector.shape_cast %62 : vector<1x16x16xf32> to vector<16x16xf32>
    %cst_35 = arith.constant dense<0.000000e+00> : vector<16x128xf32>
    %64 = tpu.matmul %63, %61, %cst_35 {dimension_numbers = #tpu.dot_dimension_numbers<[1], [0], [0], [1], [0, 0, 1, 1], [], []>} : vector<16x16xf32>, vector<16x128xf32>, vector<16x128xf32> -> vector<16x128xf32>
    %65 = arith.minimumf %61, %64 : vector<16x128xf32>
    %66 = arith.maximumf %61, %64 : vector<16x128xf32>
    %c3_36 = arith.constant 3 : index
    %c0_37 = arith.constant 0 : index
    %c0_38 = arith.constant 0 : index
    %67 = vector.load %arg14[%c3_36, %c0_37, %c0_38] : memref<10x16x1xf32, #tpu.memory_space<vmem>>, vector<1x16x1xf32>
    %68 = vector.shape_cast %67 : vector<1x16x1xf32> to vector<16x1xf32>
    %cst_39 = arith.constant 0.000000e+00 : f32
    %69 = vector.broadcast %cst_39 : f32 to vector<16x1xf32>
    %70 = arith.cmpf one, %68, %69 : vector<16x1xf32>
    %71 = vector.shape_cast %70 : vector<16x1xi1> to vector<16x1xi1>
    %72 = vector.broadcast %71 : vector<16x1xi1> to vector<16x128xi1>
    %73 = arith.select %72, %65, %66 : vector<16x128xi1>, vector<16x128xf32>
    %c4 = arith.constant 4 : index
    %c0_40 = arith.constant 0 : index
    %c0_41 = arith.constant 0 : index
    %74 = vector.load %arg13[%c4, %c0_40, %c0_41] : memref<10x16x16xf32, #tpu.memory_space<vmem>>, vector<1x16x16xf32>
    %75 = vector.shape_cast %74 : vector<1x16x16xf32> to vector<16x16xf32>
    %cst_42 = arith.constant dense<0.000000e+00> : vector<16x128xf32>
    %76 = tpu.matmul %75, %73, %cst_42 {dimension_numbers = #tpu.dot_dimension_numbers<[1], [0], [0], [1], [0, 0, 1, 1], [], []>} : vector<16x16xf32>, vector<16x128xf32>, vector<16x128xf32> -> vector<16x128xf32>
    %77 = arith.minimumf %73, %76 : vector<16x128xf32>
    %78 = arith.maximumf %73, %76 : vector<16x128xf32>
    %c4_43 = arith.constant 4 : index
    %c0_44 = arith.constant 0 : index
    %c0_45 = arith.constant 0 : index
    %79 = vector.load %arg14[%c4_43, %c0_44, %c0_45] : memref<10x16x1xf32, #tpu.memory_space<vmem>>, vector<1x16x1xf32>
    %80 = vector.shape_cast %79 : vector<1x16x1xf32> to vector<16x1xf32>
    %cst_46 = arith.constant 0.000000e+00 : f32
    %81 = vector.broadcast %cst_46 : f32 to vector<16x1xf32>
    %82 = arith.cmpf one, %80, %81 : vector<16x1xf32>
    %83 = vector.shape_cast %82 : vector<16x1xi1> to vector<16x1xi1>
    %84 = vector.broadcast %83 : vector<16x1xi1> to vector<16x128xi1>
    %85 = arith.select %84, %77, %78 : vector<16x128xi1>, vector<16x128xf32>
    %c5 = arith.constant 5 : index
    %c0_47 = arith.constant 0 : index
    %c0_48 = arith.constant 0 : index
    %86 = vector.load %arg13[%c5, %c0_47, %c0_48] : memref<10x16x16xf32, #tpu.memory_space<vmem>>, vector<1x16x16xf32>
    %87 = vector.shape_cast %86 : vector<1x16x16xf32> to vector<16x16xf32>
    %cst_49 = arith.constant dense<0.000000e+00> : vector<16x128xf32>
    %88 = tpu.matmul %87, %85, %cst_49 {dimension_numbers = #tpu.dot_dimension_numbers<[1], [0], [0], [1], [0, 0, 1, 1], [], []>} : vector<16x16xf32>, vector<16x128xf32>, vector<16x128xf32> -> vector<16x128xf32>
    %89 = arith.minimumf %85, %88 : vector<16x128xf32>
    %90 = arith.maximumf %85, %88 : vector<16x128xf32>
    %c5_50 = arith.constant 5 : index
    %c0_51 = arith.constant 0 : index
    %c0_52 = arith.constant 0 : index
    %91 = vector.load %arg14[%c5_50, %c0_51, %c0_52] : memref<10x16x1xf32, #tpu.memory_space<vmem>>, vector<1x16x1xf32>
    %92 = vector.shape_cast %91 : vector<1x16x1xf32> to vector<16x1xf32>
    %cst_53 = arith.constant 0.000000e+00 : f32
    %93 = vector.broadcast %cst_53 : f32 to vector<16x1xf32>
    %94 = arith.cmpf one, %92, %93 : vector<16x1xf32>
    %95 = vector.shape_cast %94 : vector<16x1xi1> to vector<16x1xi1>
    %96 = vector.broadcast %95 : vector<16x1xi1> to vector<16x128xi1>
    %97 = arith.select %96, %89, %90 : vector<16x128xi1>, vector<16x128xf32>
    %c6 = arith.constant 6 : index
    %c0_54 = arith.constant 0 : index
    %c0_55 = arith.constant 0 : index
    %98 = vector.load %arg13[%c6, %c0_54, %c0_55] : memref<10x16x16xf32, #tpu.memory_space<vmem>>, vector<1x16x16xf32>
    %99 = vector.shape_cast %98 : vector<1x16x16xf32> to vector<16x16xf32>
    %cst_56 = arith.constant dense<0.000000e+00> : vector<16x128xf32>
    %100 = tpu.matmul %99, %97, %cst_56 {dimension_numbers = #tpu.dot_dimension_numbers<[1], [0], [0], [1], [0, 0, 1, 1], [], []>} : vector<16x16xf32>, vector<16x128xf32>, vector<16x128xf32> -> vector<16x128xf32>
    %101 = arith.minimumf %97, %100 : vector<16x128xf32>
    %102 = arith.maximumf %97, %100 : vector<16x128xf32>
    %c6_57 = arith.constant 6 : index
    %c0_58 = arith.constant 0 : index
    %c0_59 = arith.constant 0 : index
    %103 = vector.load %arg14[%c6_57, %c0_58, %c0_59] : memref<10x16x1xf32, #tpu.memory_space<vmem>>, vector<1x16x1xf32>
    %104 = vector.shape_cast %103 : vector<1x16x1xf32> to vector<16x1xf32>
    %cst_60 = arith.constant 0.000000e+00 : f32
    %105 = vector.broadcast %cst_60 : f32 to vector<16x1xf32>
    %106 = arith.cmpf one, %104, %105 : vector<16x1xf32>
    %107 = vector.shape_cast %106 : vector<16x1xi1> to vector<16x1xi1>
    %108 = vector.broadcast %107 : vector<16x1xi1> to vector<16x128xi1>
    %109 = arith.select %108, %101, %102 : vector<16x128xi1>, vector<16x128xf32>
    %c7 = arith.constant 7 : index
    %c0_61 = arith.constant 0 : index
    %c0_62 = arith.constant 0 : index
    %110 = vector.load %arg13[%c7, %c0_61, %c0_62] : memref<10x16x16xf32, #tpu.memory_space<vmem>>, vector<1x16x16xf32>
    %111 = vector.shape_cast %110 : vector<1x16x16xf32> to vector<16x16xf32>
    %cst_63 = arith.constant dense<0.000000e+00> : vector<16x128xf32>
    %112 = tpu.matmul %111, %109, %cst_63 {dimension_numbers = #tpu.dot_dimension_numbers<[1], [0], [0], [1], [0, 0, 1, 1], [], []>} : vector<16x16xf32>, vector<16x128xf32>, vector<16x128xf32> -> vector<16x128xf32>
    %113 = arith.minimumf %109, %112 : vector<16x128xf32>
    %114 = arith.maximumf %109, %112 : vector<16x128xf32>
    %c7_64 = arith.constant 7 : index
    %c0_65 = arith.constant 0 : index
    %c0_66 = arith.constant 0 : index
    %115 = vector.load %arg14[%c7_64, %c0_65, %c0_66] : memref<10x16x1xf32, #tpu.memory_space<vmem>>, vector<1x16x1xf32>
    %116 = vector.shape_cast %115 : vector<1x16x1xf32> to vector<16x1xf32>
    %cst_67 = arith.constant 0.000000e+00 : f32
    %117 = vector.broadcast %cst_67 : f32 to vector<16x1xf32>
    %118 = arith.cmpf one, %116, %117 : vector<16x1xf32>
    %119 = vector.shape_cast %118 : vector<16x1xi1> to vector<16x1xi1>
    %120 = vector.broadcast %119 : vector<16x1xi1> to vector<16x128xi1>
    %121 = arith.select %120, %113, %114 : vector<16x128xi1>, vector<16x128xf32>
    %c8 = arith.constant 8 : index
    %c0_68 = arith.constant 0 : index
    %c0_69 = arith.constant 0 : index
    %122 = vector.load %arg13[%c8, %c0_68, %c0_69] : memref<10x16x16xf32, #tpu.memory_space<vmem>>, vector<1x16x16xf32>
    %123 = vector.shape_cast %122 : vector<1x16x16xf32> to vector<16x16xf32>
    %cst_70 = arith.constant dense<0.000000e+00> : vector<16x128xf32>
    %124 = tpu.matmul %123, %121, %cst_70 {dimension_numbers = #tpu.dot_dimension_numbers<[1], [0], [0], [1], [0, 0, 1, 1], [], []>} : vector<16x16xf32>, vector<16x128xf32>, vector<16x128xf32> -> vector<16x128xf32>
    %125 = arith.minimumf %121, %124 : vector<16x128xf32>
    %126 = arith.maximumf %121, %124 : vector<16x128xf32>
    %c8_71 = arith.constant 8 : index
    %c0_72 = arith.constant 0 : index
    %c0_73 = arith.constant 0 : index
    %127 = vector.load %arg14[%c8_71, %c0_72, %c0_73] : memref<10x16x1xf32, #tpu.memory_space<vmem>>, vector<1x16x1xf32>
    %128 = vector.shape_cast %127 : vector<1x16x1xf32> to vector<16x1xf32>
    %cst_74 = arith.constant 0.000000e+00 : f32
    %129 = vector.broadcast %cst_74 : f32 to vector<16x1xf32>
    %130 = arith.cmpf one, %128, %129 : vector<16x1xf32>
    %131 = vector.shape_cast %130 : vector<16x1xi1> to vector<16x1xi1>
    %132 = vector.broadcast %131 : vector<16x1xi1> to vector<16x128xi1>
    %133 = arith.select %132, %125, %126 : vector<16x128xi1>, vector<16x128xf32>
    %c9 = arith.constant 9 : index
    %c0_75 = arith.constant 0 : index
    %c0_76 = arith.constant 0 : index
    %134 = vector.load %arg13[%c9, %c0_75, %c0_76] : memref<10x16x16xf32, #tpu.memory_space<vmem>>, vector<1x16x16xf32>
    %135 = vector.shape_cast %134 : vector<1x16x16xf32> to vector<16x16xf32>
    %cst_77 = arith.constant dense<0.000000e+00> : vector<16x128xf32>
    %136 = tpu.matmul %135, %133, %cst_77 {dimension_numbers = #tpu.dot_dimension_numbers<[1], [0], [0], [1], [0, 0, 1, 1], [], []>} : vector<16x16xf32>, vector<16x128xf32>, vector<16x128xf32> -> vector<16x128xf32>
    %137 = arith.minimumf %133, %136 : vector<16x128xf32>
    %138 = arith.maximumf %133, %136 : vector<16x128xf32>
    %c9_78 = arith.constant 9 : index
    %c0_79 = arith.constant 0 : index
    %c0_80 = arith.constant 0 : index
    %139 = vector.load %arg14[%c9_78, %c0_79, %c0_80] : memref<10x16x1xf32, #tpu.memory_space<vmem>>, vector<1x16x1xf32>
    %140 = vector.shape_cast %139 : vector<1x16x1xf32> to vector<16x1xf32>
    %cst_81 = arith.constant 0.000000e+00 : f32
    %141 = vector.broadcast %cst_81 : f32 to vector<16x1xf32>
    %142 = arith.cmpf one, %140, %141 : vector<16x1xf32>
    %143 = vector.shape_cast %142 : vector<16x1xi1> to vector<16x1xi1>
    %144 = vector.broadcast %143 : vector<16x1xi1> to vector<16x128xi1>
    %145 = arith.select %144, %137, %138 : vector<16x128xi1>, vector<16x128xf32>
    %c0_82 = arith.constant 0 : index
    %c0_83 = arith.constant 0 : index
    %146 = vector.load %arg6[%c0_82, %c0_83] : memref<16x16xf32, #tpu.memory_space<vmem>>, vector<16x16xf32>
    %cst_84 = arith.constant dense<0.000000e+00> : vector<16x128xf32>
    %147 = tpu.matmul %146, %145, %cst_84 {dimension_numbers = #tpu.dot_dimension_numbers<[1], [0], [0], [1], [0, 0, 1, 1], [], []>} : vector<16x16xf32>, vector<16x128xf32>, vector<16x128xf32> -> vector<16x128xf32>
    %c0_85 = arith.constant 0 : index
    %c0_86 = arith.constant 0 : index
    %148 = vector.load %arg7[%c0_85, %c0_86] : memref<16x16xf32, #tpu.memory_space<vmem>>, vector<16x16xf32>
    %cst_87 = arith.constant dense<0.000000e+00> : vector<16x128xf32>
    %149 = tpu.matmul %148, %25, %cst_87 {dimension_numbers = #tpu.dot_dimension_numbers<[1], [0], [0], [1], [0, 0, 1, 1], [], []>} : vector<16x16xf32>, vector<16x128xf32>, vector<16x128xf32> -> vector<16x128xf32>
    %150 = arith.addf %147, %149 : vector<16x128xf32>
    %c0_88 = arith.constant 0 : index
    %c0_89 = arith.constant 0 : index
    %151 = vector.load %arg8[%c0_88, %c0_89] : memref<16x1xf32, #tpu.memory_space<vmem>>, vector<16x1xf32>
    %152 = vector.broadcast %151 : vector<16x1xf32> to vector<16x128xf32>
    %153 = arith.addf %150, %152 : vector<16x128xf32>
    %c0_90 = arith.constant 0 : index
    %c0_91 = arith.constant 0 : index
    %154 = vector.load %arg9[%c0_90, %c0_91] : memref<16x16xf32, #tpu.memory_space<vmem>>, vector<16x16xf32>
    %cst_92 = arith.constant dense<0.000000e+00> : vector<16x128xf32>
    %155 = tpu.matmul %154, %153, %cst_92 {dimension_numbers = #tpu.dot_dimension_numbers<[1], [0], [0], [1], [0, 0, 1, 1], [], []>} : vector<16x16xf32>, vector<16x128xf32>, vector<16x128xf32> -> vector<16x128xf32>
    %c0_93 = arith.constant 0 : index
    %c0_94 = arith.constant 0 : index
    %156 = vector.load %arg10[%c0_93, %c0_94] : memref<16x1xf32, #tpu.memory_space<vmem>>, vector<16x1xf32>
    %157 = vector.broadcast %156 : vector<16x1xf32> to vector<16x128xf32>
    %158 = arith.addf %155, %157 : vector<16x128xf32>
    %159 = arith.negf %158 : vector<16x128xf32>
    %160 = math.exp %159 : vector<16x128xf32>
    %cst_95 = arith.constant 1.000000e+00 : f32
    %161 = vector.broadcast %cst_95 : f32 to vector<16x128xf32>
    %162 = arith.addf %161, %160 : vector<16x128xf32>
    %163 = arith.divf %161, %162 : vector<16x128xf32>
    %164 = arith.mulf %25, %163 : vector<16x128xf32>
    %165 = vector.extract_strided_slice %164 {offsets = [0, 1], sizes = [16, 127], strides = [1, 1]} : vector<16x128xf32> to vector<16x127xf32>
    %166 = vector.extract_strided_slice %164 {offsets = [0, 0], sizes = [16, 1], strides = [1, 1]} : vector<16x128xf32> to vector<16x1xf32>
    %167 = tpu.concatenate %165, %166 in 1 : vector<16x127xf32>, vector<16x1xf32> -> vector<16x128xf32>
    %168 = vector.extract_strided_slice %164 {offsets = [0, 2], sizes = [16, 126], strides = [1, 1]} : vector<16x128xf32> to vector<16x126xf32>
    %169 = vector.extract_strided_slice %164 {offsets = [0, 0], sizes = [16, 2], strides = [1, 1]} : vector<16x128xf32> to vector<16x2xf32>
    %170 = tpu.concatenate %168, %169 in 1 : vector<16x126xf32>, vector<16x2xf32> -> vector<16x128xf32>
    %171 = tpu.concatenate %164, %167, %170 in 0 : vector<16x128xf32>, vector<16x128xf32>, vector<16x128xf32> -> vector<48x128xf32>
    %c0_96 = arith.constant 0 : index
    %c0_97 = arith.constant 0 : index
    %172 = vector.load %arg11[%c0_96, %c0_97] : memref<16x48xf32, #tpu.memory_space<vmem>>, vector<16x48xf32>
    %cst_98 = arith.constant dense<0.000000e+00> : vector<16x128xf32>
    %173 = tpu.matmul %172, %171, %cst_98 {dimension_numbers = #tpu.dot_dimension_numbers<[1], [0], [0], [1], [0, 0, 1, 1], [], []>} : vector<16x48xf32>, vector<48x128xf32>, vector<16x128xf32> -> vector<16x128xf32>
    %c0_99 = arith.constant 0 : index
    %c0_100 = arith.constant 0 : index
    %174 = vector.load %arg12[%c0_99, %c0_100] : memref<16x1xf32, #tpu.memory_space<vmem>>, vector<16x1xf32>
    %175 = vector.broadcast %174 : vector<16x1xf32> to vector<16x128xf32>
    %176 = arith.addf %173, %175 : vector<16x128xf32>
    %c0_101 = arith.constant 0 : index
    %c0_102 = arith.constant 0 : index
    %c0_103 = arith.constant 0 : index
    %177 = vector.load %arg15[%c0_101, %c0_102, %c0_103] : memref<1x16x128xf32, #tpu.memory_space<vmem>>, vector<1x16x128xf32>
    %178 = vector.shape_cast %177 : vector<1x16x128xf32> to vector<16x128xf32>
    %179 = vector.shape_cast %176 : vector<16x128xf32> to vector<1x16x128xf32>
    tpu.vector_store %arg15[%c0_101, %c0_102, %c0_103], %179 {strides = array<i32>} : memref<1x16x128xf32, #tpu.memory_space<vmem>>, vector<1x16x128xf32>,
    return
  }
  func.func @transform_0(%arg0: i32) -> (i32, i32, i32) {
    %c0_i32 = arith.constant 0 : i32
    %c0_i32_0 = arith.constant 0 : i32
    %c0_i32_1 = arith.constant 0 : i32
    return %arg0, %c0_i32, %c0_i32_0 : i32, i32, i32
  }
  func.func @transform_1(%arg0: i32) -> (i32, i32) {
    %c0_i32 = arith.constant 0 : i32
    %c0_i32_0 = arith.constant 0 : i32
    %c0_i32_1 = arith.constant 0 : i32
    return %c0_i32, %c0_i32_0 : i32, i32
  }
  func.func @transform_2(%arg0: i32) -> (i32, i32) {
    %c0_i32 = arith.constant 0 : i32
    %c0_i32_0 = arith.constant 0 : i32
    %c0_i32_1 = arith.constant 0 : i32
    return %c0_i32, %c0_i32_0 : i32, i32
  }
  func.func @transform_3(%arg0: i32) -> (i32, i32) {
    %c0_i32 = arith.constant 0 : i32
    %c0_i32_0 = arith.constant 0 : i32
    %c0_i32_1 = arith.constant 0 : i32
    return %c0_i32, %c0_i32_0 : i32, i32
  }
  func.func @transform_4(%arg0: i32) -> (i32, i32) {
    %c0_i32 = arith.constant 0 : i32
    %c0_i32_0 = arith.constant 0 : i32
    %c0_i32_1 = arith.constant 0 : i32
    return %c0_i32, %c0_i32_0 : i32, i32
  }
  func.func @transform_5(%arg0: i32) -> (i32, i32) {
    %c0_i32 = arith.constant 0 : i32
    %c0_i32_0 = arith.constant 0 : i32
    %c0_i32_1 = arith.constant 0 : i32
    return %c0_i32, %c0_i32_0 : i32, i32
  }
  func.func @transform_6(%arg0: i32) -> (i32, i32) {
    %c0_i32 = arith.constant 0 : i32
    %c0_i32_0 = arith.constant 0 : i32
    %c0_i32_1 = arith.constant 0 : i32
    return %c0_i32, %c0_i32_0 : i32, i32
  }
  func.func @transform_7(%arg0: i32) -> (i32, i32) {
    %c0_i32 = arith.constant 0 : i32
    %c0_i32_0 = arith.constant 0 : i32
    %c0_i32_1 = arith.constant 0 : i32
    return %c0_i32, %c0_i32_0 : i32, i32
  }
  func.func @transform_8(%arg0: i32) -> (i32, i32) {
    %c0_i32 = arith.constant 0 : i32
    %c0_i32_0 = arith.constant 0 : i32
    %c0_i32_1 = arith.constant 0 : i32
    return %c0_i32, %c0_i32_0 : i32, i32
  }
  func.func @transform_9(%arg0: i32) -> (i32, i32) {
    %c0_i32 = arith.constant 0 : i32
    %c0_i32_0 = arith.constant 0 : i32
    %c0_i32_1 = arith.constant 0 : i32
    return %c0_i32, %c0_i32_0 : i32, i32
  }
  func.func @transform_10(%arg0: i32) -> (i32, i32) {
    %c0_i32 = arith.constant 0 : i32
    %c0_i32_0 = arith.constant 0 : i32
    %c0_i32_1 = arith.constant 0 : i32
    return %c0_i32, %c0_i32_0 : i32, i32
  }
  func.func @transform_11(%arg0: i32) -> (i32, i32) {
    %c0_i32 = arith.constant 0 : i32
    %c0_i32_0 = arith.constant 0 : i32
    %c0_i32_1 = arith.constant 0 : i32
    return %c0_i32, %c0_i32_0 : i32, i32
  }
  func.func @transform_12(%arg0: i32) -> (i32, i32, i32) {
    %c0_i32 = arith.constant 0 : i32
    %c0_i32_0 = arith.constant 0 : i32
    %c0_i32_1 = arith.constant 0 : i32
    %c0_i32_2 = arith.constant 0 : i32
    return %c0_i32, %c0_i32_0, %c0_i32_1 : i32, i32, i32
  }
  func.func @transform_13(%arg0: i32) -> (i32, i32, i32) {
    %c0_i32 = arith.constant 0 : i32
    %c0_i32_0 = arith.constant 0 : i32
    %c0_i32_1 = arith.constant 0 : i32
    %c0_i32_2 = arith.constant 0 : i32
    return %c0_i32, %c0_i32_0, %c0_i32_1 : i32, i32, i32
  }
  func.func @transform_14(%arg0: i32) -> (i32, i32, i32) {
    %c0_i32 = arith.constant 0 : i32
    %c0_i32_0 = arith.constant 0 : i32
    %c0_i32_1 = arith.constant 0 : i32
    return %arg0, %c0_i32, %c0_i32_0 : i32, i32, i32
  }
}

</mosaic_0001>

<bundles_post_ra>
// kernel: _lambda_.1
= control target key start
LH: loop header
LB: loop body
LE: loop exit
PB: predicated region body
PF: predicated region fallthrough
CT: control target
= control target key end

     0   :  { %19 = vsyncpa [#allocation3], 0  ;;  %s3244_s0 = inlined_call_operand.vmem [shape: f32[2,16,128], index: 0, kind: input, shape index: {}]   ;;  %s3245_s1 = inlined_call_operand.hbm [shape: f32[16,48], index: 1, kind: input, shape index: {}]   ;;  %s3246_s2 = inlined_call_operand.hbm [shape: f32[16,1], index: 2, kind: input, shape index: {}]   ;;  %s3247_s3 = inlined_call_operand.hbm [shape: f32[16,48], index: 3, kind: input, shape index: {}]   ;;  %s3248_s4 = inlined_call_operand.hbm [shape: f32[16,1], index: 4, kind: input, shape index: {}]   ;;  %s3249_s5 = inlined_call_operand.vmem [shape: f32[16,16], index: 5, kind: input, shape index: {}]   ;;  %s3250_s6 = inlined_call_operand.vmem [shape: f32[16,16], index: 6, kind: input, shape index: {}]   ;;  %s3251_s7 = inlined_call_operand.vmem [shape: f32[16,1], index: 7, kind: input, shape index: {}]   ;;  %s3252_s8 = inlined_call_operand.vmem [shape: f32[16,16], index: 8, kind: input, shape index: {}]   ;;  %s3253_s9 = inlined_call_operand.vmem [shape: f32[16,1], index: 9, kind: input, shape index: {}]   ;;  %s3254_s10 = inlined_call_operand.vmem [shape: f32[16,48], index: 10, kind: input, shape index: {}]   ;;  %s3255_s11 = inlined_call_operand.vmem [shape: f32[16,1], index: 11, kind: input, shape index: {}]   ;;  %s3256_s12 = inlined_call_operand.vmem [shape: f32[10,16,16], index: 12, kind: input, shape index: {}]   ;;  %s3257_s13 = inlined_call_operand.vmem [shape: f32[10,16,1], index: 13, kind: input, shape index: {}]   ;;  %s3258_s14 = inlined_call_operand.vmem [shape: f32[2,16,128], index: 14, kind: output, shape index: {}]  }
   0x1   :  { %20 = vsyncpa [#allocation5], 0 }
   0x2   :  { %21 = vsyncpa [#allocation8], 0  ;;  %s2868_s29 = smov 0  }
   0x3 LB: > { %s2874_s30 = sadd.s32 4294967295, %s2782_s29   ;;  %p2295_p0 = scmp.ge.s32.totalorder %s2782_s29, 1  ;;  %s2782_s29 = sphi %s2868_s29, %s27_s29  }
   0x4   : > { %p357_p1 = scmp.lt.s32.totalorder %s2782_s29, 3  ;;  %p2625_p2 = scmp.eq.s32.totalorder %s2874_s30, 0 }
   0x5   : > { %s2784_s16 = smov [#allocation4]   ;;  %s2785_s18 = smov [#allocation2]  }
   0x6   : > { %p2879_p3 = pnand %p2295_p0, %p357_p1  ;;  %s382_s17 = sshll.u32 %s2784_s16, 4  ;;  %s383_s17 = int_to_ptr.vmem [resolvable:$true] %s382_s17 }
   0x7   : > { %s369_s19 = sshll.u32 %s2785_s18, 4  ;;  %s2786_s21 = smov [#allocation6]   ;;  %s2885_s19 = int_to_ptr.vmem [resolvable:$true] %s369_s19 }
   0x8   : > { %p2612_p4 = pneg %p2879_p3  ;;  %s395_s22 = sshll.u32 %s2786_s21, 4  ;;  %s2893_s22 = int_to_ptr.vmem [resolvable:$true] %s395_s22 }
   0x9   : > { %s2787_s23 = smov [#allocation7]   ;;  %s2671_s25 = scalar_lea.vmem %s383_s17, 256 }
   0xa   : > { %p2889_p5 = pnand %p2625_p2, %p2612_p4  ;;  %s2895_s24 = sshll.u32 %s2787_s23, 4  ;;  %s409_s24 = int_to_ptr.vmem [resolvable:$true] %s2895_s24 }
   0xb   : > { %p2672_p7 = scmp.ne.s32.totalorder %s383_s17, %s2671_s25  ;;  %p2679_p10 = scmp.lt.s32.totalorder %s383_s17, %s383_s17 }
   0xc   : > { %p2662_p6 = pneg %p2889_p5  ;;  %p2680_p11 = scmp.lt.s32.totalorder %s2671_s25, %s2671_s25 }
   0xe   : > { %p2674_p8 = pnand %p2672_p7, %p2662_p6  ;;  %p2681_p12 = por %p2680_p11, %p2679_p10 }
  0x10   : > { %p2675_p9 = pneg %p2674_p8 }
  0x12   : > { %p2682_p13 = pnand %p2681_p12, %p2675_p9 }
  0x14   : > { %2685 = shalt.err (!%p2682_p13)
}
  0x15   : > { %s2788_s26 = smov 128   ;;  %s2789_s27 = smov 8  }
  0x16   : > { %2618 = dma.hbm_to_vmem [thread:$0]  (!%p2889_p5), %s3246_s2, 256, %s383_s17, [#allocation5], %s2788_s26, %s2788_s26, %s2789_s27  }
  0x17   : > { %s2697_s18 = scalar_lea.vmem %s2885_s19, 256  ;;  %p2705_p7 = scmp.lt.s32.totalorder %s2885_s19, %s2885_s19 }
  0x18   : > { %p2698_p0 = scmp.ne.s32.totalorder %s2885_s19, %s2697_s18  ;;  %p2706_p8 = scmp.lt.s32.totalorder %s2697_s18, %s2697_s18 }
  0x1a   : > { %p2700_p1 = pnand %p2698_p0, %p2662_p6  ;;  %p2707_p9 = por %p2706_p8, %p2705_p7 }
  0x1c   : > { %p2701_p4 = pneg %p2700_p1 }
  0x1e   : > { %p2708_p10 = pnand %p2707_p9, %p2701_p4 }
  0x20   : > { %2711 = shalt.err (!%p2708_p10)
}
  0x21   : > { %2615 = dma.hbm_to_vmem [thread:$0]  (!%p2889_p5), %s3245_s1, 256, %s2885_s19, [#allocation3], %s2788_s26, %s2788_s26, %s2789_s27  }
  0x22   : > { %s2723_s23 = scalar_lea.vmem %s2893_s22, 256  ;;  %p2731_p0 = scmp.lt.s32.totalorder %s2893_s22, %s2893_s22 }
  0x23   : > { %p2724_p11 = scmp.ne.s32.totalorder %s2893_s22, %s2723_s23  ;;  %p2732_p1 = scmp.lt.s32.totalorder %s2723_s23, %s2723_s23 }
  0x25   : > { %p2726_p12 = pnand %p2724_p11, %p2662_p6  ;;  %p2733_p4 = por %p2732_p1, %p2731_p0 }
  0x27   : > { %p2727_p13 = pneg %p2726_p12 }
  0x29   : > { %p2734_p7 = pnand %p2733_p4, %p2727_p13 }
  0x2b   : > { %2737 = shalt.err (!%p2734_p7)
}
  0x2c   : > { %2621 = dma.hbm_to_vmem [thread:$0]  (!%p2889_p5), %s3247_s3, 256, %s2893_s22, [#allocation5], %s2788_s26, %s2788_s26, %s2789_s27  }
  0x2d   : > { %s2749_s28 = scalar_lea.vmem %s409_s24, 256  ;;  %p2757_p11 = scmp.lt.s32.totalorder %s409_s24, %s409_s24 }
  0x2e   : > { %p2750_p8 = scmp.ne.s32.totalorder %s409_s24, %s2749_s28  ;;  %p2758_p12 = scmp.lt.s32.totalorder %s2749_s28, %s2749_s28 }
  0x30   : > { %p2752_p9 = pnand %p2750_p8, %p2662_p6  ;;  %p2759_p13 = por %p2758_p12, %p2757_p11 }
  0x32   : > { %p2753_p10 = pneg %p2752_p9 }
  0x34   : > { %p2760_p0 = pnand %p2759_p13, %p2753_p10 }
  0x36   : > { %2763 = shalt.err (!%p2760_p0)
}
  0x37   : > { %2624 = dma.hbm_to_vmem [thread:$0]  (!%p2889_p5), %s3248_s4, 256, %s409_s24, [#allocation8], %s2788_s26, %s2788_s26, %s2789_s27  }
  0x38   : > { %459 = sbr.rel (%p2879_p3) target bundleno = 3477 (0xd95), region = 76 }
  0x3d   : > { %2769 = dma.done.wait (%p2625_p2), [#allocation3], 256  }
  0x3e   : > { %2771 = vsyncadd (%p2625_p2), [#allocation3], 4294967040 }
  0x3f   : > { %2773 = dma.done.wait (%p2625_p2), [#allocation5], 512  }
  0x40   : > { %2775 = vsyncadd (%p2625_p2), [#allocation5], 4294966784 }
  0x41   : > { %2777 = dma.done.wait (%p2625_p2), [#allocation8], 256  }
  0x42   : > { %2779 = vsyncadd (%p2625_p2), [#allocation8], 4294967040  ;;  %p517_p3 = scmp.lt.s32.totalorder %s2874_s30, 1  ;;  %v543_v1 = vld [vmem:[#allocation2] sm:$0xff]  ;;  %vm557_vm0 = vcmask 392192   ;;  %s2790_s26 = smov 126  }
  0x43   : > { %s2791_s27 = smov 127   ;;  %2472 = vmatprep.mubr.msk.f32.mxu0 %vm557_vm0, %v543_v1  ;;  %v2792_v3 = vmov 0   ;;  %v546_v4 = vld [vmem:[#allocation4 + $0x8] sm:$0xff]  ;;  %v545_v5 = vld [vmem:[#allocation4] sm:$0xff]  ;;  %v544_v10 = vld [vmem:[#allocation2 + $0x8] sm:$0xff] }
  0x44   : > { %s3262_s30 = smov (!%p517_p3, %s2874_s30), 1  ;;  %2650 = vset.pattern.permute.xlu0 %v2792_v3  ;;  %2651 = vset.pattern.permute.xlu1 %v2792_v3  ;;  %v653_v14 = vld [vmem:[#allocation6] sm:$0xff]  ;;  %v837_v18 = vld [vmem:[%s3257_s13 + $0x8] sm:$0xff]  ;;  %v656_v19 = vld [vmem:[#allocation7 + $0x8] sm:$0xff] }
  0x45   : > { %s2382_s15 = sshll.u32 %s3262_s30, 4  ;;  %2487 = vmatprep.mubr.msk.f32.mxu1 %vm557_vm0, %v653_v14  ;;  %v836_v20 = vld [vmem:[%s3257_s13] sm:$0xff]  ;;  %vm839_vm1 = vcmp.ne.f32.partialorder %v837_v18, 0.0  ;;  %v655_v21 = vld [vmem:[#allocation7] sm:$0xff]  ;;  %v2321_v22 = vld [vmem:[%s3257_s13 + $0x18] sm:$0xff] }
  0x46   : > { %s521_s24 = scalar_lea.vmem %s3244_s0, %s2382_s15  ;;  %vm838_vm2 = vcmp.ne.f32.partialorder %v836_v20, 0.0  ;;  %v841_v23 = vsel %vm839_vm1, 1, %v2792_v3  ;;  %v2320_v24 = vld [vmem:[%s3257_s13 + $0x10] sm:$0xff]  ;;  %vm944_vm3 = vcmp.ne.f32.partialorder %v2321_v22, 0.0  ;;  %v2327_v26 = vld [vmem:[%s3257_s13 + $0x28] sm:$0xff]  ;;  %v2326_v28 = vld [vmem:[%s3257_s13 + $0x20] sm:$0xff]  ;;  %s526_s22 = scalar_lea.vmem %s3258_s14, %s2382_s15 }
  0x47   : > { %v528_v0 = vld [vmem:[%s521_s24 + $0x8] sm:$0xff]  ;;  %v527_v2 = vld [vmem:[%s521_s24] sm:$0xff]  ;;  %v840_v25 = vsel %vm838_vm2, 1, %v2792_v3  ;;  %vm943_vm4 = vcmp.ne.f32.partialorder %v2320_v24, 0.0  ;;  %v946_v27 = vsel %vm944_vm3, 1, %v2792_v3  ;;  %vm1049_vm5 = vcmp.ne.f32.partialorder %v2327_v26, 0.0 }
  0x48   : > { %539 = vrot.lane.b32.xlu0 %v528_v0, %s2790_s26  ;;  %533 = vrot.lane.b32.xlu1 %v528_v0, %s2791_s27  ;;  %v945_v29 = vsel %vm943_vm4, 1, %v2792_v3  ;;  %v2333_v30 = vld [vmem:[%s3257_s13 + $0x38] sm:$0xff]  ;;  %vm1048_vm6 = vcmp.ne.f32.partialorder %v2326_v28, 0.0  ;;  %v1051_v31 = vsel %vm1049_vm5, 1, %v2792_v3  ;;  %v2332_v32 = vld [vmem:[%s3257_s13 + $0x30] sm:$0xff] }
  0x49   : > { %vm1154_vm7 = vcmp.ne.f32.partialorder %v2333_v30, 0.0  ;;  %v1050_v33 = vsel %vm1048_vm6, 1, %v2792_v3  ;;  %v2339_v34 = vld [vmem:[%s3257_s13 + $0x48] sm:$0xff]  ;;  %vm1153_vm8 = vcmp.ne.f32.partialorder %v2332_v32, 0.0  ;;  %v2338_v36 = vld [vmem:[%s3257_s13 + $0x40] sm:$0xff]  ;;  %v2345_v38 = vld [vmem:[%s3257_s13 + $0x58] sm:$0xff] }
  0x4a   : > { %v1156_v35 = vsel %vm1154_vm7, 1, %v2792_v3  ;;  %vm1259_vm9 = vcmp.ne.f32.partialorder %v2339_v34, 0.0  ;;  %v1155_v37 = vsel %vm1153_vm8, 1, %v2792_v3  ;;  %vm1258_vm10 = vcmp.ne.f32.partialorder %v2338_v36, 0.0  ;;  %v2344_v40 = vld [vmem:[%s3257_s13 + $0x50] sm:$0xff]  ;;  %v2351_v42 = vld [vmem:[%s3257_s13 + $0x68] sm:$0xff] }
  0x4b   : > { %v1261_v39 = vsel %vm1259_vm9, 1, %v2792_v3  ;;  %vm1364_vm11 = vcmp.ne.f32.partialorder %v2345_v38, 0.0  ;;  %v1260_v41 = vsel %vm1258_vm10, 1, %v2792_v3  ;;  %vm1363_vm12 = vcmp.ne.f32.partialorder %v2344_v40, 0.0  ;;  %v2350_v44 = vld [vmem:[%s3257_s13 + $0x60] sm:$0xff]  ;;  %v2357_v46 = vld [vmem:[%s3257_s13 + $0x78] sm:$0xff] }
  0x4c   : > { %537 = vrot.lane.b32.xlu0 %v527_v2, %s2790_s26  ;;  %531 = vrot.lane.b32.xlu1 %v527_v2, %s2791_s27  ;;  %v1366_v43 = vsel %vm1364_vm11, 1, %v2792_v3  ;;  %vm1469_vm13 = vcmp.ne.f32.partialorder %v2351_v42, 0.0  ;;  %v1365_v45 = vsel %vm1363_vm12, 1, %v2792_v3  ;;  %vm1468_vm14 = vcmp.ne.f32.partialorder %v2350_v44, 0.0  ;;  %v2356_v48 = vld [vmem:[%s3257_s13 + $0x70] sm:$0xff]  ;;  %v2363_v50 = vld [vmem:[%s3257_s13 + $0x88] sm:$0xff] }
  0x4d   : > { %v1471_v47 = vsel %vm1469_vm13, 1, %v2792_v3  ;;  %vm1574_vm15 = vcmp.ne.f32.partialorder %v2357_v46, 0.0  ;;  %v1470_v49 = vsel %vm1468_vm14, 1, %v2792_v3  ;;  %vm1573_vm1 = vcmp.ne.f32.partialorder %v2356_v48, 0.0  ;;  %v2362_v52 = vld [vmem:[%s3257_s13 + $0x80] sm:$0xff]  ;;  %v2369_v54 = vld [vmem:[%s3257_s13 + $0x98] sm:$0xff] }
  0x4e   : > { %v1576_v51 = vsel %vm1574_vm15, 1, %v2792_v3  ;;  %vm1679_vm2 = vcmp.ne.f32.partialorder %v2363_v50, 0.0  ;;  %v1575_v53 = vsel %vm1573_vm1, 1, %v2792_v3  ;;  %vm1678_vm3 = vcmp.ne.f32.partialorder %v2362_v52, 0.0  ;;  %v2368_v56 = vld [vmem:[%s3257_s13 + $0x90] sm:$0xff]  ;;  %v1964_v60 = vld [vmem:[%s3251_s7 + $0x8] sm:$0xff] }
  0x4f   : > { %v1681_v55 = vsel %vm1679_vm2, 1, %v2792_v3  ;;  %vm1784_vm4 = vcmp.ne.f32.partialorder %v2369_v54, 0.0  ;;  %v1680_v57 = vsel %vm1678_vm3, 1, %v2792_v3  ;;  %vm1783_vm5 = vcmp.ne.f32.partialorder %v2368_v56, 0.0  ;;  %v1963_v61 = vld [vmem:[%s3251_s7] sm:$0xff]  ;;  %v1980_v62 = vld [vmem:[%s3253_s9 + $0x8] sm:$0xff] }
  0x50   : > { %554 = vperm.xlu0 %2650, %v546_v4   ;;  %549 = vperm.xlu1 %2651, %v545_v5   ;;  %v1786_v58 = vsel %vm1784_vm4, 1, %v2792_v3  ;;  %v1785_v59 = vsel %vm1783_vm5, 1, %v2792_v3  ;;  %v1979_v63 = vld [vmem:[%s3253_s9] sm:$0xff]  ;;  %v654_v4 = vld [vmem:[#allocation6 + $0x8] sm:$0xff]  ;;  %vm750_vm6 = vcmask 130048   ;;  %v2317_v24 = vld [vmem:[%s3256_s12 + $0x18] sm:$0xff] }
  0x51   : > { %v748_v5 = vld [vmem:[%s3256_s12] sm:$0xff]  ;;  %v2323_v36 = vld [vmem:[%s3256_s12 + $0x28] sm:$0xff]  ;;  %v2329_v48 = vld [vmem:[%s3256_s12 + $0x38] sm:$0xff] }
  0xba   : > { %v540_v6 = vpop.permute.xlu0 %539  ;;  %v534_v7 = vpop.permute.xlu1 %533 }
  0xbb   : > { %2460 = vmatprep.subr.mxu0 %v540_v6 }
  0xbc   : > { %2461 = vmatpush3.msra.mxu0 %v540_v6 }
  0xbe   : > { %v538_v8 = vpop.permute.xlu0 %537  ;;  %v532_v9 = vpop.permute.xlu1 %531 }
  0xbf   : > { %2462 = vmatprep.subr.mxu0 %v538_v8 }
  0xc0   : > { %2463 = vmatpush3.msra.mxu0 %v538_v8 }
  0xc1   : > { %2464 = vmatprep.subr.mxu0 %v534_v7 }
  0xc2   : > { %2465 = vmatpush3.msra.mxu0 %v534_v7 }
  0xc3   : > { %2466 = vmatprep.subr.mxu0 %v532_v9 }
  0xc4   : > { %2467 = vmatpush3.msra.mxu0 %v532_v9 }
  0xc5   : > { %2468 = vmatprep.subr.mxu0 %v528_v0 }
  0xc6   : > { %2469 = vmatpush3.msra.mxu0 %v528_v0 }
  0xc7   : > { %2470 = vmatprep.subr.mxu0 %v527_v2 }
  0xc8   : > { %2471 = vmatpush3.msra.mxu0 %v527_v2 }
  0xc9   : > { %2473 = vmatmul.mubr.msk.f32.vlgmr.msra.gmra.mxu0 %vm557_vm0, %v544_v10 }
  0xca   : > { %2494 = vmatprep.mubr.msk.f32.mxu0 %vm750_vm6, %v748_v5 }
  0xcb   : > { %v555_v11 = vpop.permute.xlu0 %554  ;;  %v550_v13 = vpop.permute.xlu1 %549 }
 0x189   : > { %v2474_v12 = vpop.f32.mrf.mxu0 }
 0x18a   : > { %v2986_v15 = vadd.f32 %v2474_v12, %v555_v11  ;;  %v749_v12 = vld [vmem:[%s3256_s12 + $0x8] sm:$0xff] }
 0x18b   : > { %v630_v16 = vpop.f32.mrf.mxu0 }
 0x18c   : > { %v2989_v17 = vadd.f32 %v630_v16, %v550_v13  ;;  %649 = vrot.lane.b32.xlu1 %v2986_v15, %s2790_s26  ;;  %v2316_v13 = vld [vmem:[%s3256_s12 + $0x10] sm:$0xff] }
 0x18e   : > { %647 = vrot.lane.b32.xlu0 %v2989_v17, %s2790_s26 }
 0x190   : > { %643 = vrot.lane.b32.xlu1 %v2986_v15, %s2791_s27 }
 0x192   : > { %641 = vrot.lane.b32.xlu0 %v2989_v17, %s2791_s27 }
 0x194   : > { %664 = vperm.xlu1 %2651, %v656_v19  }
 0x196   : > { %659 = vperm.xlu0 %2650, %v655_v21  }
 0x198   : > { %846 = vperm.xlu1 %2651, %v841_v23  }
 0x19a   : > { %843 = vperm.xlu0 %2650, %v840_v25   ;;  %v2322_v25 = vld [vmem:[%s3256_s12 + $0x20] sm:$0xff] }
 0x19c   : > { %951 = vperm.xlu1 %2651, %v946_v27  }
 0x19e   : > { %948 = vperm.xlu0 %2650, %v945_v29  }
 0x1a0   : > { %1056 = vperm.xlu1 %2651, %v1051_v31  }
 0x1a2   : > { %1053 = vperm.xlu0 %2650, %v1050_v33  }
 0x1a4   : > { %1161 = vperm.xlu1 %2651, %v1156_v35  }
 0x1a6   : > { %1158 = vperm.xlu0 %2650, %v1155_v37   ;;  %v2328_v37 = vld [vmem:[%s3256_s12 + $0x30] sm:$0xff] }
 0x1a8   : > { %1266 = vperm.xlu1 %2651, %v1261_v39  }
 0x1aa   : > { %1263 = vperm.xlu0 %2650, %v1260_v41  }
 0x1ac   : > { %1371 = vperm.xlu1 %2651, %v1366_v43  }
 0x1ae   : > { %1368 = vperm.xlu0 %2650, %v1365_v45  }
 0x1b0   : > { %1476 = vperm.xlu1 %2651, %v1471_v47  }
 0x1b2   : > { %1473 = vperm.xlu0 %2650, %v1470_v49   ;;  %v2334_v49 = vld [vmem:[%s3256_s12 + $0x40] sm:$0xff] }
 0x1b4   : > { %1581 = vperm.xlu1 %2651, %v1576_v51  }
 0x1b6   : > { %1578 = vperm.xlu0 %2650, %v1575_v53  }
 0x1b8   : > { %1686 = vperm.xlu1 %2651, %v1681_v55  }
 0x1ba   : > { %1683 = vperm.xlu0 %2650, %v1680_v57  }
 0x1bc   : > { %1791 = vperm.xlu1 %2651, %v1786_v58  }
 0x1be   : > { %1788 = vperm.xlu0 %2650, %v1785_v59  }
 0x1c0   : > { %1972 = vperm.xlu1 %2651, %v1964_v60   ;;  %v2335_v60 = vld [vmem:[%s3256_s12 + $0x48] sm:$0xff] }
 0x1c2   : > { %1967 = vperm.xlu0 %2650, %v1963_v61   ;;  %v2340_v61 = vld [vmem:[%s3256_s12 + $0x50] sm:$0xff] }
 0x1c4   : > { %1988 = vperm.xlu1 %2651, %v1980_v62  }
 0x1c6   : > { %1983 = vperm.xlu0 %2650, %v1979_v63  }
 0x1fe   : > { %v650_v0 = vpop.permute.xlu1 %649 }
 0x1ff   : > { %2475 = vmatprep.subr.mxu1 %v650_v0 }
 0x200   : > { %2476 = vmatpush3.msra.mxu1 %v650_v0  ;;  %v648_v1 = vpop.permute.xlu0 %647 }
 0x201   : > { %2477 = vmatprep.subr.mxu1 %v648_v1 }
 0x202   : > { %v644_v2 = vpop.permute.xlu1 %643  ;;  %2478 = vmatpush3.msra.mxu1 %v648_v1 }
 0x203   : > { %2479 = vmatprep.subr.mxu1 %v644_v2 }
 0x204   : > { %2480 = vmatpush3.msra.mxu1 %v644_v2  ;;  %v642_v3 = vpop.permute.xlu0 %641 }
 0x205   : > { %2481 = vmatprep.subr.mxu1 %v642_v3 }
 0x206   : > { %2482 = vmatpush3.msra.mxu1 %v642_v3 }
 0x207   : > { %2483 = vmatprep.subr.mxu1 %v2986_v15 }
 0x208   : > { %2484 = vmatpush3.msra.mxu1 %v2986_v15 }
 0x209   : > { %2485 = vmatprep.subr.mxu1 %v2989_v17 }
 0x20a   : > { %2486 = vmatpush3.msra.mxu1 %v2989_v17 }
 0x20b   : > { %2488 = vmatmul.mubr.msk.f32.vlgmr.msra.gmra.mxu1 %vm557_vm0, %v654_v4 }
 0x20c   : > { %2515 = vmatprep.mubr.msk.f32.mxu1 %vm750_vm6, %v2328_v37 }
 0x20f   : > { %v665_v6 = vpop.permute.xlu1 %664 }
 0x211   : > { %v660_v9 = vpop.permute.xlu0 %659 }
 0x213   : > { %v847_v14 = vpop.permute.xlu1 %846 }
 0x214   : > { %vm849_vm7 = vcmp.eq.s32.totalorder %v847_v14, 1 }
 0x215   : > { %v844_v16 = vpop.permute.xlu0 %843 }
 0x216   : > { %vm848_vm8 = vcmp.eq.s32.totalorder %v844_v16, 1 }
 0x217   : > { %v952_v26 = vpop.permute.xlu1 %951 }
 0x218   : > { %vm954_vm9 = vcmp.eq.s32.totalorder %v952_v26, 1 }
 0x219   : > { %v949_v28 = vpop.permute.xlu0 %948 }
 0x21a   : > { %vm953_vm10 = vcmp.eq.s32.totalorder %v949_v28, 1 }
 0x21b   : > { %v1057_v38 = vpop.permute.xlu1 %1056 }
 0x21c   : > { %vm1059_vm11 = vcmp.eq.s32.totalorder %v1057_v38, 1 }
 0x21d   : > { %v1054_v40 = vpop.permute.xlu0 %1053 }
 0x21e   : > { %vm1058_vm12 = vcmp.eq.s32.totalorder %v1054_v40, 1 }
 0x21f   : > { %v1162_v50 = vpop.permute.xlu1 %1161 }
 0x220   : > { %vm1164_vm13 = vcmp.eq.s32.totalorder %v1162_v50, 1 }
 0x221   : > { %v1159_v52 = vpop.permute.xlu0 %1158 }
 0x222   : > { %vm1163_vm14 = vcmp.eq.s32.totalorder %v1159_v52, 1 }
 0x223   : > { %v1267_v62 = vpop.permute.xlu1 %1266 }
 0x224   : > { %vm1269_vm15 = vcmp.eq.s32.totalorder %v1267_v62, 1 }
 0x225   : > { %v1264_v0 = vpop.permute.xlu0 %1263 }
 0x226   : > { %vm1268_vm1 = vcmp.eq.s32.totalorder %v1264_v0, 1 }
 0x229   : > { %v1369_v14 = vpop.permute.xlu0 %1368 }
 0x22a   : > { %vm1373_vm3 = vcmp.eq.s32.totalorder %v1369_v14, 1 }
 0x22d   : > { %v1474_v26 = vpop.permute.xlu0 %1473 }
 0x22e   : > { %vm1478_vm5 = vcmp.eq.s32.totalorder %v1474_v26, 1 }
 0x231   : > { %v1579_v38 = vpop.permute.xlu0 %1578 }
 0x235   : > { %v1684_v50 = vpop.permute.xlu0 %1683 }
 0x239   : > { %v1789_v0 = vpop.permute.xlu0 %1788 }
 0x2cb   : > { %v2489_v7 = vpop.f32.mrf.mxu1 }
 0x2cc   : > { %v3100_v8 = vadd.f32 %v2489_v7, %v665_v6 }
 0x2cd   : > { %v739_v10 = vpop.f32.mrf.mxu1 }
 0x2ce   : > { %v3102_v11 = vadd.f32 %v739_v10, %v660_v9  ;;  %2490 = vmatprep.subr.mxu0 %v3100_v8  ;;  %v2341_v9 = vld [vmem:[%s3256_s12 + $0x58] sm:$0xff]  ;;  %v2346_v10 = vld [vmem:[%s3256_s12 + $0x60] sm:$0xff] }
 0x2cf   : > { %2491 = vmatpush3.msra.mxu0 %v3100_v8 }
 0x2d0   : > { %2492 = vmatprep.subr.mxu0 %v3102_v11 }
 0x2d1   : > { %2493 = vmatpush3.msra.mxu0 %v3102_v11 }
 0x2d2   : > { %2495 = vmatmul.mubr.msk.f32.vlgmr.msra.gmra.mxu0 %vm750_vm6, %v749_v12  ;;  %v1372_v12 = vpop.permute.xlu1 %1371 }
 0x2d3   : > { %2501 = vmatprep.mubr.msk.f32.mxu0 %vm750_vm6, %v2316_v13  ;;  %vm1374_vm2 = vcmp.eq.s32.totalorder %v1372_v12, 1 }
 0x392   : > { %v2496_v15 = vpop.f32.mrf.mxu0 }
 0x393   : > { %v833_v17 = vmin.f32 %v3100_v8, %v2496_v15  ;;  %v835_v18 = vmax.f32 %v3100_v8, %v2496_v15 }
 0x394   : > { %v823_v19 = vpop.f32.mrf.mxu0 }
 0x395   : > { %v832_v20 = vmin.f32 %v3102_v11, %v823_v19  ;;  %v834_v21 = vmax.f32 %v3102_v11, %v823_v19  ;;  %v851_v22 = vsel %vm849_vm7, %v833_v17, %v835_v18 }
 0x396   : > { %2497 = vmatprep.subr.mxu0 %v851_v22 }
 0x397   : > { %2498 = vmatpush3.msra.mxu0 %v851_v22  ;;  %v850_v23 = vsel %vm848_vm8, %v832_v20, %v834_v21  ;;  %vm1583_vm8 = vcmp.eq.s32.totalorder %v1579_v38, 1 }
 0x398   : > { %2499 = vmatprep.subr.mxu0 %v850_v23 }
 0x399   : > { %2500 = vmatpush3.msra.mxu0 %v850_v23 }
 0x39a   : > { %2502 = vmatmul.mubr.msk.f32.vlgmr.msra.gmra.mxu0 %vm750_vm6, %v2317_v24  ;;  %v1477_v24 = vpop.permute.xlu1 %1476 }
 0x39b   : > { %2508 = vmatprep.mubr.msk.f32.mxu0 %vm750_vm6, %v2322_v25  ;;  %vm1479_vm4 = vcmp.eq.s32.totalorder %v1477_v24, 1 }
 0x45a   : > { %v2503_v27 = vpop.f32.mrf.mxu0 }
 0x45b   : > { %v937_v29 = vmin.f32 %v851_v22, %v2503_v27  ;;  %v939_v30 = vmax.f32 %v851_v22, %v2503_v27  ;;  %v2347_v22 = vld [vmem:[%s3256_s12 + $0x68] sm:$0xff] }
 0x45c   : > { %v927_v31 = vpop.f32.mrf.mxu0 }
 0x45d   : > { %v936_v32 = vmin.f32 %v850_v23, %v927_v31  ;;  %v938_v33 = vmax.f32 %v850_v23, %v927_v31  ;;  %v956_v34 = vsel %vm954_vm9, %v937_v29, %v939_v30  ;;  %v2352_v23 = vld [vmem:[%s3256_s12 + $0x70] sm:$0xff] }
 0x45e   : > { %2504 = vmatprep.subr.mxu0 %v956_v34 }
 0x45f   : > { %2505 = vmatpush3.msra.mxu0 %v956_v34  ;;  %v955_v35 = vsel %vm953_vm10, %v936_v32, %v938_v33  ;;  %vm1688_vm10 = vcmp.eq.s32.totalorder %v1684_v50, 1 }
 0x460   : > { %2506 = vmatprep.subr.mxu0 %v955_v35 }
 0x461   : > { %2507 = vmatpush3.msra.mxu0 %v955_v35 }
 0x462   : > { %2509 = vmatmul.mubr.msk.f32.vlgmr.msra.gmra.mxu0 %vm750_vm6, %v2323_v36  ;;  %v1582_v36 = vpop.permute.xlu1 %1581 }
 0x463   : > { %2522 = vmatprep.mubr.msk.f32.mxu0 %vm750_vm6, %v2334_v49  ;;  %vm1584_vm7 = vcmp.eq.s32.totalorder %v1582_v36, 1  ;;  %v2100_v36 = vld [vmem:[%s3254_s10] sm:$0xff] }
 0x522   : > { %v2510_v39 = vpop.f32.mrf.mxu0 }
 0x523   : > { %v1042_v41 = vmin.f32 %v956_v34, %v2510_v39  ;;  %v1044_v42 = vmax.f32 %v956_v34, %v2510_v39  ;;  %v2353_v34 = vld [vmem:[%s3256_s12 + $0x78] sm:$0xff] }
 0x524   : > { %v1032_v43 = vpop.f32.mrf.mxu0 }
 0x525   : > { %v1041_v44 = vmin.f32 %v955_v35, %v1032_v43  ;;  %v1043_v45 = vmax.f32 %v955_v35, %v1032_v43  ;;  %v1061_v46 = vsel %vm1059_vm11, %v1042_v41, %v1044_v42  ;;  %v2358_v35 = vld [vmem:[%s3256_s12 + $0x80] sm:$0xff] }
 0x526   : > { %2511 = vmatprep.subr.mxu1 %v1061_v46 }
 0x527   : > { %2512 = vmatpush3.msra.mxu1 %v1061_v46  ;;  %v1060_v47 = vsel %vm1058_vm12, %v1041_v44, %v1043_v45  ;;  %vm1793_vm12 = vcmp.eq.s32.totalorder %v1789_v0, 1 }
 0x528   : > { %2513 = vmatprep.subr.mxu1 %v1060_v47 }
 0x529   : > { %2514 = vmatpush3.msra.mxu1 %v1060_v47 }
 0x52a   : > { %2516 = vmatmul.mubr.msk.f32.vlgmr.msra.gmra.mxu1 %vm750_vm6, %v2329_v48  ;;  %v1687_v48 = vpop.permute.xlu1 %1686 }
 0x52b   : > { %2529 = vmatprep.mubr.msk.f32.mxu1 %vm750_vm6, %v2340_v61  ;;  %vm1689_vm9 = vcmp.eq.s32.totalorder %v1687_v48, 1  ;;  %v1797_v61 = vld [vmem:[%s3249_s5] sm:$0xff] }
 0x52e   : > { %v1792_v62 = vpop.permute.xlu1 %1791 }
 0x52f   : > { %vm1794_vm11 = vcmp.eq.s32.totalorder %v1792_v62, 1 }
 0x532   : > { %v1973_v14 = vpop.permute.xlu1 %1972 }
 0x5ea   : > { %v2517_v51 = vpop.f32.mrf.mxu1 }
 0x5eb   : > { %v1147_v53 = vmin.f32 %v1061_v46, %v2517_v51  ;;  %v1149_v54 = vmax.f32 %v1061_v46, %v2517_v51  ;;  %v2359_v46 = vld [vmem:[%s3256_s12 + $0x88] sm:$0xff] }
 0x5ec   : > { %v1137_v55 = vpop.f32.mrf.mxu1 }
 0x5ed   : > { %v1146_v56 = vmin.f32 %v1060_v47, %v1137_v55  ;;  %v1148_v57 = vmax.f32 %v1060_v47, %v1137_v55  ;;  %v1166_v58 = vsel %vm1164_vm13, %v1147_v53, %v1149_v54  ;;  %v2364_v47 = vld [vmem:[%s3256_s12 + $0x90] sm:$0xff] }
 0x5ee   : > { %2518 = vmatprep.subr.mxu0 %v1166_v58 }
 0x5ef   : > { %2519 = vmatpush3.msra.mxu0 %v1166_v58  ;;  %v1165_v59 = vsel %vm1163_vm14, %v1146_v56, %v1148_v57 }
 0x5f0   : > { %2520 = vmatprep.subr.mxu0 %v1165_v59 }
 0x5f1   : > { %2521 = vmatpush3.msra.mxu0 %v1165_v59 }
 0x5f2   : > { %2523 = vmatmul.mubr.msk.f32.vlgmr.msra.gmra.mxu0 %vm750_vm6, %v2335_v60  ;;  %v1800_v60 = vld [vmem:[%s3250_s6 + $0x8] sm:$0xff] }
 0x5f3   : > { %2536 = vmatprep.mubr.msk.f32.mxu0 %vm750_vm6, %v2346_v10  ;;  %v1977_v10 = vld [vmem:[%s3252_s8] sm:$0xff] }
 0x6b2   : > { %v2524_v63 = vpop.f32.mrf.mxu0 }
 0x6b3   : > { %v1252_v1 = vmin.f32 %v1166_v58, %v2524_v63  ;;  %v1254_v2 = vmax.f32 %v1166_v58, %v2524_v63  ;;  %v2365_v58 = vld [vmem:[%s3256_s12 + $0x98] sm:$0xff] }
 0x6b4   : > { %v1242_v3 = vpop.f32.mrf.mxu0 }
 0x6b5   : > { %v1251_v4 = vmin.f32 %v1165_v59, %v1242_v3  ;;  %v1253_v5 = vmax.f32 %v1165_v59, %v1242_v3  ;;  %v1271_v6 = vsel %vm1269_vm15, %v1252_v1, %v1254_v2  ;;  %v1799_v59 = vld [vmem:[%s3250_s6] sm:$0xff] }
 0x6b6   : > { %2525 = vmatprep.subr.mxu1 %v1271_v6 }
 0x6b7   : > { %2526 = vmatpush3.msra.mxu1 %v1271_v6  ;;  %v1270_v7 = vsel %vm1268_vm1, %v1251_v4, %v1253_v5 }
 0x6b8   : > { %2527 = vmatprep.subr.mxu1 %v1270_v7 }
 0x6b9   : > { %2528 = vmatpush3.msra.mxu1 %v1270_v7 }
 0x6ba   : > { %2530 = vmatmul.mubr.msk.f32.vlgmr.msra.gmra.mxu1 %vm750_vm6, %v2341_v9  ;;  %v1798_v9 = vld [vmem:[%s3249_s5 + $0x8] sm:$0xff] }
 0x6bb   : > { %2543 = vmatprep.mubr.msk.f32.mxu1 %vm750_vm6, %v2352_v23  ;;  %v1989_v23 = vpop.permute.xlu1 %1988 }
 0x77a   : > { %v2531_v13 = vpop.f32.mrf.mxu1 }
 0x77b   : > { %v1357_v15 = vmin.f32 %v1271_v6, %v2531_v13  ;;  %v1359_v16 = vmax.f32 %v1271_v6, %v2531_v13 }
 0x77c   : > { %v1347_v17 = vpop.f32.mrf.mxu1 }
 0x77d   : > { %v1356_v18 = vmin.f32 %v1270_v7, %v1347_v17  ;;  %v1358_v19 = vmax.f32 %v1270_v7, %v1347_v17  ;;  %v1376_v20 = vsel %vm1374_vm2, %v1357_v15, %v1359_v16 }
 0x77e   : > { %2532 = vmatprep.subr.mxu0 %v1376_v20 }
 0x77f   : > { %2533 = vmatpush3.msra.mxu0 %v1376_v20  ;;  %v1375_v21 = vsel %vm1373_vm3, %v1356_v18, %v1358_v19 }
 0x780   : > { %2534 = vmatprep.subr.mxu0 %v1375_v21 }
 0x781   : > { %2535 = vmatpush3.msra.mxu0 %v1375_v21 }
 0x782   : > { %2537 = vmatmul.mubr.msk.f32.vlgmr.msra.gmra.mxu0 %vm750_vm6, %v2347_v22  ;;  %v1978_v22 = vld [vmem:[%s3252_s8 + $0x8] sm:$0xff] }
 0x783   : > { %2550 = vmatprep.mubr.msk.f32.mxu0 %vm750_vm6, %v2358_v35 }
 0x842   : > { %v2538_v25 = vpop.f32.mrf.mxu0 }
 0x843   : > { %v1462_v27 = vmin.f32 %v1376_v20, %v2538_v25  ;;  %v1464_v28 = vmax.f32 %v1376_v20, %v2538_v25  ;;  %v1968_v20 = vpop.permute.xlu0 %1967 }
 0x844   : > { %v1452_v29 = vpop.f32.mrf.mxu0 }
 0x845   : > { %v1461_v30 = vmin.f32 %v1375_v21, %v1452_v29  ;;  %v1463_v31 = vmax.f32 %v1375_v21, %v1452_v29  ;;  %v1481_v32 = vsel %vm1479_vm4, %v1462_v27, %v1464_v28 }
 0x846   : > { %2539 = vmatprep.subr.mxu1 %v1481_v32 }
 0x847   : > { %2540 = vmatpush3.msra.mxu1 %v1481_v32  ;;  %v1480_v33 = vsel %vm1478_vm5, %v1461_v30, %v1463_v31  ;;  %v1984_v26 = vpop.permute.xlu0 %1983 }
 0x848   : > { %2541 = vmatprep.subr.mxu1 %v1480_v33 }
 0x849   : > { %2542 = vmatpush3.msra.mxu1 %v1480_v33 }
 0x84a   : > { %2544 = vmatmul.mubr.msk.f32.vlgmr.msra.gmra.mxu1 %vm750_vm6, %v2353_v34 }
 0x84b   : > { %2557 = vmatprep.mubr.msk.f32.mxu1 %vm750_vm6, %v2364_v47 }
 0x90a   : > { %v2545_v37 = vpop.f32.mrf.mxu1 }
 0x90b   : > { %v1567_v39 = vmin.f32 %v1481_v32, %v2545_v37  ;;  %v1569_v40 = vmax.f32 %v1481_v32, %v2545_v37 }
 0x90c   : > { %v1557_v41 = vpop.f32.mrf.mxu1 }
 0x90d   : > { %v1566_v42 = vmin.f32 %v1480_v33, %v1557_v41  ;;  %v1568_v43 = vmax.f32 %v1480_v33, %v1557_v41  ;;  %v1586_v44 = vsel %vm1584_vm7, %v1567_v39, %v1569_v40  ;;  %v2102_v40 = vld [vmem:[%s3255_s11] sm:$0xff] }
 0x90e   : > { %2546 = vmatprep.subr.mxu0 %v1586_v44 }
 0x90f   : > { %2547 = vmatpush3.msra.mxu0 %v1586_v44  ;;  %v1585_v45 = vsel %vm1583_vm8, %v1566_v42, %v1568_v43 }
 0x910   : > { %2548 = vmatprep.subr.mxu0 %v1585_v45 }
 0x911   : > { %2549 = vmatpush3.msra.mxu0 %v1585_v45 }
 0x912   : > { %2551 = vmatmul.mubr.msk.f32.vlgmr.msra.gmra.mxu0 %vm750_vm6, %v2359_v46  ;;  %2560 = vmatprep.subr.mxu0 %v3100_v8 }
 0x913   : > { %2561 = vmatpush3.msra.mxu0 %v3100_v8  ;;  %2564 = vmatprep.mubr.msk.f32.mxu0 %vm750_vm6, %v1799_v59 }
 0x914   : > { %2562 = vmatprep.subr.mxu0 %v3102_v11 }
 0x915   : > { %2563 = vmatpush3.msra.mxu0 %v3102_v11 }
 0x916   : > { %2565 = vmatmul.mubr.msk.f32.vlgmr.msra.gmra.mxu0 %vm750_vm6, %v1800_v60 }
 0x917   : > { %2578 = vmatprep.mubr.msk.f32.mxu0 %vm750_vm6, %v1977_v10 }
 0x9d2   : > { %v2552_v49 = vpop.f32.mrf.mxu0 }
 0x9d3   : > { %v1672_v51 = vmin.f32 %v1586_v44, %v2552_v49  ;;  %v1674_v52 = vmax.f32 %v1586_v44, %v2552_v49  ;;  %v2101_v44 = vld [vmem:[%s3254_s10 + $0x8] sm:$0xff] }
 0x9d4   : > { %v1662_v53 = vpop.f32.mrf.mxu0 }
 0x9d5   : > { %v1671_v54 = vmin.f32 %v1585_v45, %v1662_v53  ;;  %v1673_v55 = vmax.f32 %v1585_v45, %v1662_v53  ;;  %v1691_v56 = vsel %vm1689_vm9, %v1672_v51, %v1674_v52 }
 0x9d6   : > { %2553 = vmatprep.subr.mxu1 %v1691_v56  ;;  %v2566_v12 = vpop.f32.mrf.mxu0 }
 0x9d7   : > { %2554 = vmatpush3.msra.mxu1 %v1691_v56  ;;  %v1690_v57 = vsel %vm1688_vm10, %v1671_v54, %v1673_v55 }
 0x9d8   : > { %2555 = vmatprep.subr.mxu1 %v1690_v57  ;;  %v1873_v16 = vpop.f32.mrf.mxu0 }
 0x9d9   : > { %2556 = vmatpush3.msra.mxu1 %v1690_v57 }
 0x9da   : > { %2558 = vmatmul.mubr.msk.f32.vlgmr.msra.gmra.mxu1 %vm750_vm6, %v2365_v58 }
 0x9db   : > { %2571 = vmatprep.mubr.msk.f32.mxu1 %vm750_vm6, %v1797_v61 }
 0xa9a   : > { %v2559_v63 = vpop.f32.mrf.mxu1 }
 0xa9b   : > { %v1777_v1 = vmin.f32 %v1691_v56, %v2559_v63  ;;  %v1779_v2 = vmax.f32 %v1691_v56, %v2559_v63 }
 0xa9c   : > { %v1767_v3 = vpop.f32.mrf.mxu1 }
 0xa9d   : > { %v1776_v4 = vmin.f32 %v1690_v57, %v1767_v3  ;;  %v1778_v5 = vmax.f32 %v1690_v57, %v1767_v3  ;;  %v1796_v6 = vsel %vm1794_vm11, %v1777_v1, %v1779_v2 }
 0xa9e   : > { %2567 = vmatprep.subr.mxu1 %v1796_v6 }
 0xa9f   : > { %2568 = vmatpush3.msra.mxu1 %v1796_v6  ;;  %v1795_v7 = vsel %vm1793_vm12, %v1776_v4, %v1778_v5 }
 0xaa0   : > { %2569 = vmatprep.subr.mxu1 %v1795_v7 }
 0xaa1   : > { %2570 = vmatpush3.msra.mxu1 %v1795_v7 }
 0xaa2   : > { %2572 = vmatmul.mubr.msk.f32.vlgmr.msra.gmra.mxu1 %vm750_vm6, %v1798_v9 }
 0xaa3   : > { %2593 = vmatprep.mubr.msk.f32.mxu1 %vm557_vm0, %v2100_v36 }
 0xb62   : > { %v2573_v13 = vpop.f32.mrf.mxu1 }
 0xb63   : > { %v1960_v15 = vadd.f32 %v2573_v13, %v2566_v12 }
 0xb64   : > { %v1954_v17 = vpop.f32.mrf.mxu1 }
 0xb65   : > { %v1976_v18 = vadd.f32 %v1973_v14, %v1960_v15  ;;  %v1955_v19 = vadd.f32 %v1954_v17, %v1873_v16 }
 0xb67   : > { %v1975_v21 = vadd.f32 %v1968_v20, %v1955_v19  ;;  %2574 = vmatprep.subr.mxu0 %v1976_v18 }
 0xb68   : > { %2575 = vmatpush3.msra.mxu0 %v1976_v18 }
 0xb69   : > { %2576 = vmatprep.subr.mxu0 %v1975_v21 }
 0xb6a   : > { %2577 = vmatpush3.msra.mxu0 %v1975_v21 }
 0xb6b   : > { %2579 = vmatmul.mubr.msk.f32.vlgmr.msra.gmra.mxu0 %vm750_vm6, %v1978_v22 }
 0xc2b   : > { %v2580_v24 = vpop.f32.mrf.mxu0 }
 0xc2c   : > { %v2069_v25 = vadd.f32 %v2580_v24, %v1989_v23 }
 0xc2d   : > { %v2063_v27 = vpop.f32.mrf.mxu0 }
 0xc2e   : > { %v2377_v28 = vmul.f32 -1.442695, %v2069_v25  ;;  %v2064_v29 = vadd.f32 %v2063_v27, %v1984_v26 }
 0xc30   : > { %2652 = vpow2.f32 %v2377_v28  ;;  %v2376_v30 = vmul.f32 -1.442695, %v2064_v29 }
 0xc32   : > { %2654 = vpow2.f32 %v2376_v30 }
 0xc3d   : > { %v2653_v31 = vpop.eup %2652 }
 0xc3e   : > { %v2079_v32 = vadd.f32 1.0, %v2653_v31 }
 0xc3f   : > { %v2655_v33 = vpop.eup %2654 }
 0xc40   : > { %2656 = vrcp.f32 %v2079_v32  ;;  %v2078_v34 = vadd.f32 1.0, %v2655_v33 }
 0xc42   : > { %2658 = vrcp.f32 %v2078_v34 }
 0xc4d   : > { %v2657_v35 = vpop.eup %2656 }
 0xc4e   : > { %v2085_v37 = vmul.f32 %v2657_v35, %v3100_v8  ;;  %v2103_v8 = vld [vmem:[%s3255_s11 + $0x8] sm:$0xff] }
 0xc4f   : > { %v2659_v38 = vpop.eup %2658 }
 0xc50   : > { %2096 = vrot.lane.b32.xlu1 %v2085_v37, %s2790_s26  ;;  %v2084_v39 = vmul.f32 %v2659_v38, %v3102_v11 }
 0xc52   : > { %2094 = vrot.lane.b32.xlu0 %v2084_v39, %s2790_s26 }
 0xc54   : > { %2090 = vrot.lane.b32.xlu1 %v2085_v37, %s2791_s27 }
 0xc56   : > { %2088 = vrot.lane.b32.xlu0 %v2084_v39, %s2791_s27 }
 0xc58   : > { %2106 = vperm.xlu1 %2651, %v2102_v40  }
 0xc5a   : > { %2111 = vperm.xlu0 %2650, %v2103_v8  }
 0xcc2   : > { %v2097_v41 = vpop.permute.xlu1 %2096 }
 0xcc3   : > { %2581 = vmatprep.subr.mxu1 %v2097_v41 }
 0xcc4   : > { %2582 = vmatpush3.msra.mxu1 %v2097_v41  ;;  %v2095_v11 = vpop.permute.xlu0 %2094 }
 0xcc5   : > { %2583 = vmatprep.subr.mxu1 %v2095_v11 }
 0xcc6   : > { %v2091_v42 = vpop.permute.xlu1 %2090  ;;  %2584 = vmatpush3.msra.mxu1 %v2095_v11 }
 0xcc7   : > { %2585 = vmatprep.subr.mxu1 %v2091_v42 }
 0xcc8   : > { %2586 = vmatpush3.msra.mxu1 %v2091_v42  ;;  %v2089_v43 = vpop.permute.xlu0 %2088 }
 0xcc9   : > { %2587 = vmatprep.subr.mxu1 %v2089_v43 }
 0xcca   : > { %2588 = vmatpush3.msra.mxu1 %v2089_v43 }
 0xccb   : > { %2589 = vmatprep.subr.mxu1 %v2085_v37 }
 0xccc   : > { %2590 = vmatpush3.msra.mxu1 %v2085_v37 }
 0xccd   : > { %2591 = vmatprep.subr.mxu1 %v2084_v39 }
 0xcce   : > { %2592 = vmatpush3.msra.mxu1 %v2084_v39 }
 0xccf   : > { %2594 = vmatmul.mubr.msk.f32.vlgmr.msra.gmra.mxu1 %vm557_vm0, %v2101_v44 }
 0xcd3   : > { %v2107_v48 = vpop.permute.xlu1 %2106 }
 0xcd5   : > { %v2112_v45 = vpop.permute.xlu0 %2111 }
 0xd8f   : > { %v2595_v46 = vpop.f32.mrf.mxu1 }
 0xd90   : > { %v2192_v47 = vadd.f32 %v2595_v46, %v2112_v45 }
 0xd91   : > { %v2186_v49 = vpop.f32.mrf.mxu1 }
 0xd92   : > { %2196 = vst [vmem:[%s526_s22 + $0x8] sm:$0xff] %v2192_v47  ;;  %v2187_v50 = vadd.f32 %v2186_v49, %v2107_v48 }
 0xd94   : > { %2195 = vst [vmem:[%s526_s22] sm:$0xff] %v2187_v50 }
 0xd95 PF: > { %s27_s29 = sadd.s32 1, %s2782_s29  }
 0xd96   : > { %p24_p2 = scmp.ge.s32.totalorder %s27_s29, 4  }
 0xd98   :  { %26 = sbr.rel (!%p24_p2) target bundleno = 3 (0x3), region = 141 }
 0xd9d   :  { %2218 = vsyncpa [#allocation3], 1 }
 0xd9e   :  { %2220 = vsyncpa [#allocation3 + $0x1], 1 }
 0xd9f   :  { %2221 = vsyncpa [#allocation5], 1 }
 0xda0   :  { %2222 = vsyncpa [#allocation8], 1 }

</bundles_post_ra>
